<compile_context>
chip_gen: v7x
topology: tpu7x:2x2x1
jax: 0.10.0
libtpu: 0.0.40
codegen_flags: <defaults>
</compile_context>

<pallas_src>
import functools
import math

import jax
import jax.numpy as jnp
from jax.experimental import pallas as pl
from jax.experimental.pallas import tpu as pltpu

LN_EPS = 1e-5                      # PyTorch nn.LayerNorm default
_MB = 1024 * 1024


def _chip_config():
    """Generation-aware VMEM budget and tile preferences."""
    vmem_cap = None
    try:
        info = pltpu.get_tpu_info()
        vmem_cap = getattr(info, "vmem_capacity_bytes", None)
    except Exception:
        vmem_cap = None
    if vmem_cap is None:
        vmem_cap = 64 * _MB                      # conservative fallback
    if vmem_cap >= 100 * _MB:
        # v5e / v6e: 128 MiB physical VMEM -> big tiles, 96 MiB scoped budget.
        return dict(vmem_limit=96 * _MB, tm=1024, tn=1024, th=1024)
    # v7x: 64 MiB per TensorCore -> keep budget / row tiles smaller so
    # double-buffering stays alive.
    return dict(vmem_limit=48 * _MB, tm=512, tn=512, th=512)


_CFG = _chip_config()


def _round_up(x, m):
    return ((x + m - 1) // m) * m


def _pick_tile(dim, pref, mult):
    """Largest tile <= pref that divides dim and is a multiple of mult; else full dim."""
    if dim <= pref:
        return dim
    t = (pref // mult) * mult
    while t >= mult:
        if dim % t == 0:
            return t
        t -= mult
    return dim


def _row_plan(M, pref):
    """Row tile + padded row count.  Row tiles are multiples of 8; padded rows
    are zero-filled in the wrapper and sliced off afterwards."""
    pref = max(8, (pref // 8) * 8)
    if M <= pref:
        tm = _round_up(M, 8)
        return tm, tm
    return pref, _round_up(M, pref)


# --------------------- fused LayerNorm + Linear (K resident) ----------------
# grid = (row blocks [parallel], output-column blocks [arbitrary]).
# LN(x) is computed once at j==0 into a VMEM scratch (weight dtype) and reused
# for the remaining column tiles.

def _make_ln_linear_kernel(activation, has_bias):
    def kern(x_ref, g_ref, bln_ref, w_ref, *rest):
        if has_bias:
            b_ref, o_ref, xn_ref = rest
        else:
            o_ref, xn_ref = rest

        @pl.when(pl.program_id(1) == 0)
        def _():
            x = x_ref[...].astype(jnp.float32)
            mu = jnp.mean(x, axis=-1, keepdims=True)
            var = jnp.mean((x - mu) ** 2, axis=-1, keepdims=True)  # biased (torch)
            xn = (x - mu) * jax.lax.rsqrt(var + LN_EPS)
            xn = xn * g_ref[...].astype(jnp.float32) + bln_ref[...].astype(jnp.float32)
            xn_ref[...] = xn.astype(xn_ref.dtype)

        y = jnp.dot(xn_ref[...], w_ref[...], preferred_element_type=jnp.float32)
        if has_bias:
            y = y + b_ref[...].astype(jnp.float32)
        if activation == "quick_gelu":                          # x * sigmoid(1.702 x)
            y = y * jax.nn.sigmoid(1.702 * y)
        o_ref[...] = y.astype(o_ref.dtype)
    return kern


def fused_ln_linear(x2d, gamma, beta, w, b=None, activation=None):
    # out = activation(LN(x2d) @ w + b)
    M, K = x2d.shape
    K2, N = w.shape
    assert K == K2
    tm, M_pad = _row_plan(M, _CFG["tm"])
    if M_pad != M:
        x2d = jnp.pad(x2d, ((0, M_pad - M), (0, 0)))
    tn = _pick_tile(N, _CFG["tn"], 128)
    grid = (M_pad // tm, N // tn)

    in_specs = [
        pl.BlockSpec((tm, K), lambda i, j: (i, 0)),   # x rows (full D for the LN reduce)
        pl.BlockSpec((1, K), lambda i, j: (0, 0)),    # gamma
        pl.BlockSpec((1, K), lambda i, j: (0, 0)),    # beta
        pl.BlockSpec((K, tn), lambda i, j: (0, j)),   # weight column slab
    ]
    args = [x2d, gamma.reshape(1, K), beta.reshape(1, K), w]
    if b is not None:
        in_specs.append(pl.BlockSpec((1, tn), lambda i, j: (0, j)))
        args.append(b.reshape(1, N))

    out = pl.pallas_call(
        _make_ln_linear_kernel(activation, b is not None),
        out_shape=jax.ShapeDtypeStruct((M_pad, N), x2d.dtype),
        grid=grid,
        in_specs=in_specs,
        out_specs=pl.BlockSpec((tm, tn), lambda i, j: (i, j)),
        scratch_shapes=[pltpu.VMEM((tm, K), w.dtype)],          # LN(x), resident over j
        compiler_params=pltpu.CompilerParams(
            dimension_semantics=("parallel", "arbitrary"),
            vmem_limit_bytes=_CFG["vmem_limit"]),
    )(*args)
    return out[:M] if M_pad != M else out


# ---- fused MLP block: LN2 + c_fc + QuickGELU + c_proj + residual -----------
# Pipelines over the 4*D hidden dim; the [M, 4D] hidden activation stays in VMEM.

def _mlp_kernel(x_ref, g_ref, bln_ref, wfc_ref, bfc_ref, wpj_ref, bpj_ref,
                o_ref, xn_ref, acc_ref):
    k = pl.program_id(1)

    @pl.when(k == 0)
    def _():
        x = x_ref[...].astype(jnp.float32)
        mu = jnp.mean(x, axis=-1, keepdims=True)
        var = jnp.mean((x - mu) ** 2, axis=-1, keepdims=True)
        xn = (x - mu) * jax.lax.rsqrt(var + LN_EPS)
        xn = xn * g_ref[...].astype(jnp.float32) + bln_ref[...].astype(jnp.float32)
        xn_ref[...] = xn.astype(xn_ref.dtype)                  # stored in weight dtype
        acc_ref[...] = jnp.zeros_like(acc_ref)

    h = jnp.dot(xn_ref[...], wfc_ref[...], preferred_element_type=jnp.float32)
    h = h + bfc_ref[...].astype(jnp.float32)
    h = h * jax.nn.sigmoid(1.702 * h)                           # QuickGELU
    acc_ref[...] += jnp.dot(h.astype(wpj_ref.dtype), wpj_ref[...],
                            preferred_element_type=jnp.float32)

    @pl.when(k == pl.num_programs(1) - 1)
    def _():
        y = acc_ref[...] + bpj_ref[...].astype(jnp.float32) + x_ref[...].astype(jnp.float32)
        o_ref[...] = y.astype(o_ref.dtype)


def fused_mlp_block(x2d, gamma, beta, w_fc, b_fc, w_proj, b_proj):
    # out = x2d + c_proj(QuickGELU(c_fc(LN(x2d))))
    M, D = x2d.shape
    D2, Hd = w_fc.shape
    assert D == D2 and w_proj.shape == (Hd, D)
    tm, M_pad = _row_plan(M, _CFG["tm"])
    if M_pad != M:
        x2d = jnp.pad(x2d, ((0, M_pad - M), (0, 0)))
    th = _pick_tile(Hd, _CFG["th"], 128)
    grid = (M_pad // tm, Hd // th)

    out = pl.pallas_call(
        _mlp_kernel,
        out_shape=jax.ShapeDtypeStruct((M_pad, D), x2d.dtype),
        grid=grid,
        in_specs=[
            pl.BlockSpec((tm, D), lambda i, k: (i, 0)),   # x (also the residual)
            pl.BlockSpec((1, D), lambda i, k: (0, 0)),    # ln2 gamma
            pl.BlockSpec((1, D), lambda i, k: (0, 0)),    # ln2 beta
            pl.BlockSpec((D, th), lambda i, k: (0, k)),   # c_fc weight slab
            pl.BlockSpec((1, th), lambda i, k: (0, k)),   # c_fc bias slab
            pl.BlockSpec((th, D), lambda i, k: (k, 0)),   # c_proj weight slab
            pl.BlockSpec((1, D), lambda i, k: (0, 0)),    # c_proj bias
        ],
        out_specs=pl.BlockSpec((tm, D), lambda i, k: (i, 0)),
        scratch_shapes=[pltpu.VMEM((tm, D), w_fc.dtype),    # LN(x), weight dtype
                        pltpu.VMEM((tm, D), jnp.float32)],  # f32 accumulator
        compiler_params=pltpu.CompilerParams(
            dimension_semantics=("parallel", "arbitrary"),
            vmem_limit_bytes=_CFG["vmem_limit"]),
    )(x2d, gamma.reshape(1, D), beta.reshape(1, D),
      w_fc, b_fc.reshape(1, Hd), w_proj, b_proj.reshape(1, D))
    return out[:M] if M_pad != M else out


# ---------- multi-head attention + out-projection + residual (per batch) ----
# Each grid step handles one batch element: per-head q/k/v are sliced straight
# from the ref (no full-slab f32 cast), each head's (L, dh) output is scattered
# into a (L, D) VMEM scratch, then one dot with the VMEM-resident w_o plus
# bias + residual writes the post-attention activation directly (no extra
# [B,L,D] HBM round trip).
# TODO(synk): with B < 2x core count on v7x one TensorCore idles on this kernel;
# splitting heads across the grid would turn the fused out-proj into a
# reduction axis, so it is left per-batch.

def _make_attn_kernel(n_heads, dh):
    D = n_heads * dh
    scale = 1.0 / math.sqrt(dh)

    def kern(qkv_ref, res_ref, wo_ref, bo_ref, o_ref, attn_ref):
        L = qkv_ref.shape[1]
        row = jax.lax.broadcasted_iota(jnp.int32, (L, L), 0)
        col = jax.lax.broadcasted_iota(jnp.int32, (L, L), 1)
        neg = jnp.where(col > row, jnp.float32(-1e30), jnp.float32(0.0))  # causal
        for h in range(n_heads):                                          # static loop
            q = qkv_ref[0, :, pl.ds(h * dh, dh)].astype(jnp.float32) * scale
            k = qkv_ref[0, :, pl.ds(D + h * dh, dh)].astype(jnp.float32)
            v = qkv_ref[0, :, pl.ds(2 * D + h * dh, dh)].astype(jnp.float32)
            # contract on the last dim of both operands -> no XLU transpose
            s = jax.lax.dot_general(q, k, (((1,), (1,)), ((), ())),
                                    preferred_element_type=jnp.float32)
            s = s + neg
            s = s - jnp.max(s, axis=-1, keepdims=True)
            p = jnp.exp(s)
            p = p / jnp.sum(p, axis=-1, keepdims=True)          # exact softmax divide
            o_h = jnp.dot(p, v, preferred_element_type=jnp.float32)
            attn_ref[:, pl.ds(h * dh, dh)] = o_h.astype(attn_ref.dtype)
        # fused out-projection + bias + residual, one lane-dense store
        y = jnp.dot(attn_ref[...], wo_ref[...], preferred_element_type=jnp.float32)
        y = y + bo_ref[...].astype(jnp.float32) + res_ref[0].astype(jnp.float32)
        o_ref[0] = y.astype(o_ref.dtype)

    return kern


def pallas_attn_block(qkv, x, w_o, b_o, n_heads):
    # out[b] = x[b] + causal_MHA(qkv[b]) @ w_o + b_o
    B, L, threeD = qkv.shape
    D = threeD // 3
    dh = D // n_heads
    return pl.pallas_call(
        _make_attn_kernel(n_heads, dh),
        out_shape=jax.ShapeDtypeStruct((B, L, D), x.dtype),
        grid=(B,),
        in_specs=[
            pl.BlockSpec((1, L, threeD), lambda b: (b, 0, 0)),  # QKV slab for batch b
            pl.BlockSpec((1, L, D), lambda b: (b, 0, 0)),       # residual (pre-LN x)
            pl.BlockSpec((D, D), lambda b: (0, 0)),             # w_o, VMEM-resident
            pl.BlockSpec((1, D), lambda b: (0, 0)),             # b_o
        ],
        out_specs=pl.BlockSpec((1, L, D), lambda b: (b, 0, 0)),
        scratch_shapes=[pltpu.VMEM((L, D), w_o.dtype)],         # concat'd head outputs
        compiler_params=pltpu.CompilerParams(
            dimension_semantics=("parallel",),
            vmem_limit_bytes=_CFG["vmem_limit"]),
    )(qkv, x, w_o, b_o.reshape(1, D))


# --------------------------- model (JAX glue) -------------------------------

def residual_attention_block(x, lp, n_heads):
    B, L, D = x.shape
    x2 = x.reshape(B * L, D)

    # attention branch: x = x + out_proj(attn(ln_1(x)))
    #   LN1 fused into the QKV projection; attention, out-projection, bias and
    #   residual all fused in one per-batch kernel.
    qkv = fused_ln_linear(x2, lp["ln1_g"], lp["ln1_b"], lp["w_qkv"], lp["b_qkv"])
    x = pallas_attn_block(qkv.reshape(B, L, 3 * D), x, lp["w_o"], lp["b_o"], n_heads)

    # MLP branch: x = x + c_proj(QuickGELU(c_fc(ln_2(x))))   (fully fused)
    x2 = fused_mlp_block(x.reshape(B * L, D), lp["ln2_g"], lp["ln2_b"],
                         lp["w_fc"], lp["b_fc"], lp["w_proj"], lp["b_proj"])
    return x2.reshape(B, L, D)


def text_encoder_forward(prompts, tokenized_prompts, params, n_heads):
    # prompts: [B, L, D]; tokenized_prompts: [B, L] (argmax over L -> EOT position)
    B, L, D = prompts.shape
    x = prompts + params["pos_emb"][None, :, :]

    # seq-first permute in PyTorch is layout-only; math is batch-first here.
    for lp in params["layers"]:
        x = residual_attention_block(x, lp, n_heads)

    # LN is row-wise, so ln_final(x)[b, eot] == ln_final(x[b, eot]); gather first,
    # then a single fused ln_final + text_projection kernel (no bias).
    eot = jnp.argmax(tokenized_prompts, axis=-1)                      # [B]
    x_eot = x[jnp.arange(B), eot]                                     # [B, D]
    out = fused_ln_linear(x_eot, params["ln_f_g"], params["ln_f_b"],
                          params["text_proj"], b=None)                # [B, d_out]
    return out


# ------------------------- deterministic param init -------------------------

SEQ_LEN = 8


def init_params(key, n_layers, d_model, d_out):
    def nrm(k, shape, std=0.02):
        return jax.random.normal(k, shape, jnp.float32) * std

    layers = []
    keys = jax.random.split(key, n_layers + 2)
    for li in range(n_layers):
        ks = jax.random.split(keys[li], 8)
        layers.append(dict(
            ln1_g=jnp.ones((d_model,), jnp.float32),
            ln1_b=jnp.zeros((d_model,), jnp.float32),
            w_qkv=nrm(ks[0], (d_model, 3 * d_model)),
            b_qkv=nrm(ks[1], (3 * d_model,)),
            w_o=nrm(ks[2], (d_model, d_model)),
            b_o=nrm(ks[3], (d_model,)),
            ln2_g=jnp.ones((d_model,), jnp.float32),
            ln2_b=jnp.zeros((d_model,), jnp.float32),
            w_fc=nrm(ks[4], (d_model, 4 * d_model)),
            b_fc=nrm(ks[5], (4 * d_model,)),
            w_proj=nrm(ks[6], (4 * d_model, d_model)),
            b_proj=nrm(ks[7], (d_model,)),
        ))
    kp, kt = jax.random.split(keys[n_layers], 2)
    return dict(
        layers=layers,
        pos_emb=nrm(kp, (SEQ_LEN, d_model)),
        ln_f_g=jnp.ones((d_model,), jnp.float32),
        ln_f_b=jnp.zeros((d_model,), jnp.float32),
        text_proj=nrm(kt, (d_model, d_out)),
    )


# ----------------------------------- main ------------------------------------

if __name__ == "__main__":
    B, L, D, H, N_LAYERS, D_OUT = 2, SEQ_LEN, 32, 4, 2, 32

    key = jax.random.PRNGKey(0)
    k_params, k_prompts, k_tok = jax.random.split(key, 3)

    params = init_params(k_params, N_LAYERS, D, D_OUT)
    prompts = jax.random.normal(k_prompts, (B, L, D), jnp.float32)
    tokenized_prompts = jax.random.randint(k_tok, (B, L), 0, 100, jnp.int32)

    fwd = jax.jit(functools.partial(text_encoder_forward, n_heads=H))
    out = fwd(prompts, tokenized_prompts, params)
    out = jax.block_until_ready(out)

    assert out.shape == (B, D_OUT)
    assert bool(jnp.all(jnp.isfinite(out)))
    print("KERNEL_OK")
</pallas_src>

<mosaic_0001>
module attributes {stable_mosaic.version = 11 : i64} {
  func.func @kern(%arg0: i32, %arg1: memref<1x8x96xf32, #tpu.memory_space<vmem>>, %arg2: memref<1x8x32xf32, #tpu.memory_space<vmem>>, %arg3: memref<32x32xf32, #tpu.memory_space<vmem>>, %arg4: memref<1x32xf32, #tpu.memory_space<vmem>>, %arg5: memref<1x8x32xf32, #tpu.memory_space<vmem>>, %arg6: memref<8x32xf32, #tpu.memory_space<vmem>>) attributes {dimension_semantics = [#tpu.dimension_semantics<parallel>], iteration_bounds = array<i64: 2>, scalar_prefetch = 0 : i64, scratch_operands = 1 : i64, tpu.core_type = #tpu.core_type<tc>, window_params = [{transform_indices = @transform_0, window_bounds = array<i64: 1, 8, 96>}, {transform_indices = @transform_1, window_bounds = array<i64: 1, 8, 32>}, {pipeline_mode = #tpu.pipeline_mode<synchronous>, transform_indices = @transform_2, window_bounds = array<i64: 32, 32>}, {pipeline_mode = #tpu.pipeline_mode<synchronous>, transform_indices = @transform_3, window_bounds = array<i64: 1, 32>}, {transform_indices = @transform_4, window_bounds = array<i64: 1, 8, 32>}]} {
    %0 = tpu.iota {dimensions = array<i32: 0>} : vector<8x8xi32>
    %1 = tpu.iota {dimensions = array<i32: 1>} : vector<8x8xi32>
    %2 = arith.cmpi sgt, %1, %0 : vector<8x8xi32>
    %cst = arith.constant -1.000000e+30 : f32
    %cst_0 = arith.constant 0.000000e+00 : f32
    %3 = vector.broadcast %cst : f32 to vector<8x8xf32>
    %4 = vector.broadcast %cst_0 : f32 to vector<8x8xf32>
    %5 = arith.select %2, %3, %4 : vector<8x8xi1>, vector<8x8xf32>
    %c0 = arith.constant 0 : index
    %c0_1 = arith.constant 0 : index
    %c0_2 = arith.constant 0 : index
    %6 = vector.load %arg1[%c0, %c0_1, %c0_2] : memref<1x8x96xf32, #tpu.memory_space<vmem>>, vector<1x8x8xf32>
    %7 = vector.shape_cast %6 : vector<1x8x8xf32> to vector<8x8xf32>
    %cst_3 = arith.constant 0.353553385 : f32
    %8 = vector.broadcast %cst_3 : f32 to vector<8x8xf32>
    %9 = arith.mulf %7, %8 : vector<8x8xf32>
    %c0_4 = arith.constant 0 : index
    %c0_5 = arith.constant 0 : index
    %c32 = arith.constant 32 : index
    %10 = vector.load %arg1[%c0_4, %c0_5, %c32] : memref<1x8x96xf32, #tpu.memory_space<vmem>>, vector<1x8x8xf32>
    %11 = vector.shape_cast %10 : vector<1x8x8xf32> to vector<8x8xf32>
    %c0_6 = arith.constant 0 : index
    %c0_7 = arith.constant 0 : index
    %c64 = arith.constant 64 : index
    %12 = vector.load %arg1[%c0_6, %c0_7, %c64] : memref<1x8x96xf32, #tpu.memory_space<vmem>>, vector<1x8x8xf32>
    %13 = vector.shape_cast %12 : vector<1x8x8xf32> to vector<8x8xf32>
    %cst_8 = arith.constant dense<0.000000e+00> : vector<8x8xf32>
    %14 = tpu.matmul %9, %11, %cst_8 {dimension_numbers = #tpu.dot_dimension_numbers<[1], [1], [0], [0], [0, 0, 1, 0], [], []>} : vector<8x8xf32>, vector<8x8xf32>, vector<8x8xf32> -> vector<8x8xf32>
    %15 = arith.addf %14, %5 : vector<8x8xf32>
    %cst_9 = arith.constant dense<0xFF800000> : vector<8xf32>
    %16 = vector.multi_reduction <maximumf>, %15, %cst_9 [1] : vector<8x8xf32> to vector<8xf32>
    %17 = vector.shape_cast %16 : vector<8xf32> to vector<8x1xf32>
    %18 = vector.broadcast %17 : vector<8x1xf32> to vector<8x8xf32>
    %19 = arith.subf %15, %18 : vector<8x8xf32>
    %20 = math.exp %19 : vector<8x8xf32>
    %cst_10 = arith.constant dense<0.000000e+00> : vector<8xf32>
    %21 = vector.multi_reduction <add>, %20, %cst_10 [1] : vector<8x8xf32> to vector<8xf32>
    %22 = vector.shape_cast %21 : vector<8xf32> to vector<8x1xf32>
    %23 = vector.broadcast %22 : vector<8x1xf32> to vector<8x8xf32>
    %24 = arith.divf %20, %23 : vector<8x8xf32>
    %cst_11 = arith.constant dense<0.000000e+00> : vector<8x8xf32>
    %25 = tpu.matmul %24, %13, %cst_11 {dimension_numbers = #tpu.dot_dimension_numbers<[1], [0], [0], [1], [0, 0, 1, 1], [], []>} : vector<8x8xf32>, vector<8x8xf32>, vector<8x8xf32> -> vector<8x8xf32>
    %c0_12 = arith.constant 0 : index
    %c0_13 = arith.constant 0 : index
    %26 = vector.load %arg6[%c0_12, %c0_13] : memref<8x32xf32, #tpu.memory_space<vmem>>, vector<8x8xf32>
    tpu.vector_store %arg6[%c0_12, %c0_13], %25 {strides = array<i32>} : memref<8x32xf32, #tpu.memory_space<vmem>>, vector<8x8xf32>,
    %c0_14 = arith.constant 0 : index
    %c0_15 = arith.constant 0 : index
    %c8 = arith.constant 8 : index
    %27 = vector.load %arg1[%c0_14, %c0_15, %c8] : memref<1x8x96xf32, #tpu.memory_space<vmem>>, vector<1x8x8xf32>
    %28 = vector.shape_cast %27 : vector<1x8x8xf32> to vector<8x8xf32>
    %cst_16 = arith.constant 0.353553385 : f32
    %29 = vector.broadcast %cst_16 : f32 to vector<8x8xf32>
    %30 = arith.mulf %28, %29 : vector<8x8xf32>
    %c0_17 = arith.constant 0 : index
    %c0_18 = arith.constant 0 : index
    %c40 = arith.constant 40 : index
    %31 = vector.load %arg1[%c0_17, %c0_18, %c40] : memref<1x8x96xf32, #tpu.memory_space<vmem>>, vector<1x8x8xf32>
    %32 = vector.shape_cast %31 : vector<1x8x8xf32> to vector<8x8xf32>
    %c0_19 = arith.constant 0 : index
    %c0_20 = arith.constant 0 : index
    %c72 = arith.constant 72 : index
    %33 = vector.load %arg1[%c0_19, %c0_20, %c72] : memref<1x8x96xf32, #tpu.memory_space<vmem>>, vector<1x8x8xf32>
    %34 = vector.shape_cast %33 : vector<1x8x8xf32> to vector<8x8xf32>
    %cst_21 = arith.constant dense<0.000000e+00> : vector<8x8xf32>
    %35 = tpu.matmul %30, %32, %cst_21 {dimension_numbers = #tpu.dot_dimension_numbers<[1], [1], [0], [0], [0, 0, 1, 0], [], []>} : vector<8x8xf32>, vector<8x8xf32>, vector<8x8xf32> -> vector<8x8xf32>
    %36 = arith.addf %35, %5 : vector<8x8xf32>
    %cst_22 = arith.constant dense<0xFF800000> : vector<8xf32>
    %37 = vector.multi_reduction <maximumf>, %36, %cst_22 [1] : vector<8x8xf32> to vector<8xf32>
    %38 = vector.shape_cast %37 : vector<8xf32> to vector<8x1xf32>
    %39 = vector.broadcast %38 : vector<8x1xf32> to vector<8x8xf32>
    %40 = arith.subf %36, %39 : vector<8x8xf32>
    %41 = math.exp %40 : vector<8x8xf32>
    %cst_23 = arith.constant dense<0.000000e+00> : vector<8xf32>
    %42 = vector.multi_reduction <add>, %41, %cst_23 [1] : vector<8x8xf32> to vector<8xf32>
    %43 = vector.shape_cast %42 : vector<8xf32> to vector<8x1xf32>
    %44 = vector.broadcast %43 : vector<8x1xf32> to vector<8x8xf32>
    %45 = arith.divf %41, %44 : vector<8x8xf32>
    %cst_24 = arith.constant dense<0.000000e+00> : vector<8x8xf32>
    %46 = tpu.matmul %45, %34, %cst_24 {dimension_numbers = #tpu.dot_dimension_numbers<[1], [0], [0], [1], [0, 0, 1, 1], [], []>} : vector<8x8xf32>, vector<8x8xf32>, vector<8x8xf32> -> vector<8x8xf32>
    %c0_25 = arith.constant 0 : index
    %c8_26 = arith.constant 8 : index
    %47 = vector.load %arg6[%c0_25, %c8_26] : memref<8x32xf32, #tpu.memory_space<vmem>>, vector<8x8xf32>
    tpu.vector_store %arg6[%c0_25, %c8_26], %46 {strides = array<i32>} : memref<8x32xf32, #tpu.memory_space<vmem>>, vector<8x8xf32>,
    %c0_27 = arith.constant 0 : index
    %c0_28 = arith.constant 0 : index
    %c16 = arith.constant 16 : index
    %48 = vector.load %arg1[%c0_27, %c0_28, %c16] : memref<1x8x96xf32, #tpu.memory_space<vmem>>, vector<1x8x8xf32>
    %49 = vector.shape_cast %48 : vector<1x8x8xf32> to vector<8x8xf32>
    %cst_29 = arith.constant 0.353553385 : f32
    %50 = vector.broadcast %cst_29 : f32 to vector<8x8xf32>
    %51 = arith.mulf %49, %50 : vector<8x8xf32>
    %c0_30 = arith.constant 0 : index
    %c0_31 = arith.constant 0 : index
    %c48 = arith.constant 48 : index
    %52 = vector.load %arg1[%c0_30, %c0_31, %c48] : memref<1x8x96xf32, #tpu.memory_space<vmem>>, vector<1x8x8xf32>
    %53 = vector.shape_cast %52 : vector<1x8x8xf32> to vector<8x8xf32>
    %c0_32 = arith.constant 0 : index
    %c0_33 = arith.constant 0 : index
    %c80 = arith.constant 80 : index
    %54 = vector.load %arg1[%c0_32, %c0_33, %c80] : memref<1x8x96xf32, #tpu.memory_space<vmem>>, vector<1x8x8xf32>
    %55 = vector.shape_cast %54 : vector<1x8x8xf32> to vector<8x8xf32>
    %cst_34 = arith.constant dense<0.000000e+00> : vector<8x8xf32>
    %56 = tpu.matmul %51, %53, %cst_34 {dimension_numbers = #tpu.dot_dimension_numbers<[1], [1], [0], [0], [0, 0, 1, 0], [], []>} : vector<8x8xf32>, vector<8x8xf32>, vector<8x8xf32> -> vector<8x8xf32>
    %57 = arith.addf %56, %5 : vector<8x8xf32>
    %cst_35 = arith.constant dense<0xFF800000> : vector<8xf32>
    %58 = vector.multi_reduction <maximumf>, %57, %cst_35 [1] : vector<8x8xf32> to vector<8xf32>
    %59 = vector.shape_cast %58 : vector<8xf32> to vector<8x1xf32>
    %60 = vector.broadcast %59 : vector<8x1xf32> to vector<8x8xf32>
    %61 = arith.subf %57, %60 : vector<8x8xf32>
    %62 = math.exp %61 : vector<8x8xf32>
    %cst_36 = arith.constant dense<0.000000e+00> : vector<8xf32>
    %63 = vector.multi_reduction <add>, %62, %cst_36 [1] : vector<8x8xf32> to vector<8xf32>
    %64 = vector.shape_cast %63 : vector<8xf32> to vector<8x1xf32>
    %65 = vector.broadcast %64 : vector<8x1xf32> to vector<8x8xf32>
    %66 = arith.divf %62, %65 : vector<8x8xf32>
    %cst_37 = arith.constant dense<0.000000e+00> : vector<8x8xf32>
    %67 = tpu.matmul %66, %55, %cst_37 {dimension_numbers = #tpu.dot_dimension_numbers<[1], [0], [0], [1], [0, 0, 1, 1], [], []>} : vector<8x8xf32>, vector<8x8xf32>, vector<8x8xf32> -> vector<8x8xf32>
    %c0_38 = arith.constant 0 : index
    %c16_39 = arith.constant 16 : index
    %68 = vector.load %arg6[%c0_38, %c16_39] : memref<8x32xf32, #tpu.memory_space<vmem>>, vector<8x8xf32>
    tpu.vector_store %arg6[%c0_38, %c16_39], %67 {strides = array<i32>} : memref<8x32xf32, #tpu.memory_space<vmem>>, vector<8x8xf32>,
    %c0_40 = arith.constant 0 : index
    %c0_41 = arith.constant 0 : index
    %c24 = arith.constant 24 : index
    %69 = vector.load %arg1[%c0_40, %c0_41, %c24] : memref<1x8x96xf32, #tpu.memory_space<vmem>>, vector<1x8x8xf32>
    %70 = vector.shape_cast %69 : vector<1x8x8xf32> to vector<8x8xf32>
    %cst_42 = arith.constant 0.353553385 : f32
    %71 = vector.broadcast %cst_42 : f32 to vector<8x8xf32>
    %72 = arith.mulf %70, %71 : vector<8x8xf32>
    %c0_43 = arith.constant 0 : index
    %c0_44 = arith.constant 0 : index
    %c56 = arith.constant 56 : index
    %73 = vector.load %arg1[%c0_43, %c0_44, %c56] : memref<1x8x96xf32, #tpu.memory_space<vmem>>, vector<1x8x8xf32>
    %74 = vector.shape_cast %73 : vector<1x8x8xf32> to vector<8x8xf32>
    %c0_45 = arith.constant 0 : index
    %c0_46 = arith.constant 0 : index
    %c88 = arith.constant 88 : index
    %75 = vector.load %arg1[%c0_45, %c0_46, %c88] : memref<1x8x96xf32, #tpu.memory_space<vmem>>, vector<1x8x8xf32>
    %76 = vector.shape_cast %75 : vector<1x8x8xf32> to vector<8x8xf32>
    %cst_47 = arith.constant dense<0.000000e+00> : vector<8x8xf32>
    %77 = tpu.matmul %72, %74, %cst_47 {dimension_numbers = #tpu.dot_dimension_numbers<[1], [1], [0], [0], [0, 0, 1, 0], [], []>} : vector<8x8xf32>, vector<8x8xf32>, vector<8x8xf32> -> vector<8x8xf32>
    %78 = arith.addf %77, %5 : vector<8x8xf32>
    %cst_48 = arith.constant dense<0xFF800000> : vector<8xf32>
    %79 = vector.multi_reduction <maximumf>, %78, %cst_48 [1] : vector<8x8xf32> to vector<8xf32>
    %80 = vector.shape_cast %79 : vector<8xf32> to vector<8x1xf32>
    %81 = vector.broadcast %80 : vector<8x1xf32> to vector<8x8xf32>
    %82 = arith.subf %78, %81 : vector<8x8xf32>
    %83 = math.exp %82 : vector<8x8xf32>
    %cst_49 = arith.constant dense<0.000000e+00> : vector<8xf32>
    %84 = vector.multi_reduction <add>, %83, %cst_49 [1] : vector<8x8xf32> to vector<8xf32>
    %85 = vector.shape_cast %84 : vector<8xf32> to vector<8x1xf32>
    %86 = vector.broadcast %85 : vector<8x1xf32> to vector<8x8xf32>
    %87 = arith.divf %83, %86 : vector<8x8xf32>
    %cst_50 = arith.constant dense<0.000000e+00> : vector<8x8xf32>
    %88 = tpu.matmul %87, %76, %cst_50 {dimension_numbers = #tpu.dot_dimension_numbers<[1], [0], [0], [1], [0, 0, 1, 1], [], []>} : vector<8x8xf32>, vector<8x8xf32>, vector<8x8xf32> -> vector<8x8xf32>
    %c0_51 = arith.constant 0 : index
    %c24_52 = arith.constant 24 : index
    %89 = vector.load %arg6[%c0_51, %c24_52] : memref<8x32xf32, #tpu.memory_space<vmem>>, vector<8x8xf32>
    tpu.vector_store %arg6[%c0_51, %c24_52], %88 {strides = array<i32>} : memref<8x32xf32, #tpu.memory_space<vmem>>, vector<8x8xf32>,
    %c0_53 = arith.constant 0 : index
    %c0_54 = arith.constant 0 : index
    %90 = vector.load %arg6[%c0_53, %c0_54] : memref<8x32xf32, #tpu.memory_space<vmem>>, vector<8x32xf32>
    %c0_55 = arith.constant 0 : index
    %c0_56 = arith.constant 0 : index
    %91 = vector.load %arg3[%c0_55, %c0_56] : memref<32x32xf32, #tpu.memory_space<vmem>>, vector<32x32xf32>
    %cst_57 = arith.constant dense<0.000000e+00> : vector<8x32xf32>
    %92 = tpu.matmul %90, %91, %cst_57 {dimension_numbers = #tpu.dot_dimension_numbers<[1], [0], [0], [1], [0, 0, 1, 1], [], []>} : vector<8x32xf32>, vector<32x32xf32>, vector<8x32xf32> -> vector<8x32xf32>
    %c0_58 = arith.constant 0 : index
    %c0_59 = arith.constant 0 : index
    %93 = vector.load %arg4[%c0_58, %c0_59] : memref<1x32xf32, #tpu.memory_space<vmem>>, vector<1x32xf32>
    %94 = vector.broadcast %93 : vector<1x32xf32> to vector<8x32xf32>
    %95 = arith.addf %92, %94 : vector<8x32xf32>
    %c0_60 = arith.constant 0 : index
    %c0_61 = arith.constant 0 : index
    %c0_62 = arith.constant 0 : index
    %96 = vector.load %arg2[%c0_60, %c0_61, %c0_62] : memref<1x8x32xf32, #tpu.memory_space<vmem>>, vector<1x8x32xf32>
    %97 = vector.shape_cast %96 : vector<1x8x32xf32> to vector<8x32xf32>
    %98 = arith.addf %95, %97 : vector<8x32xf32>
    %c0_63 = arith.constant 0 : index
    %c0_64 = arith.constant 0 : index
    %c0_65 = arith.constant 0 : index
    %99 = vector.load %arg5[%c0_63, %c0_64, %c0_65] : memref<1x8x32xf32, #tpu.memory_space<vmem>>, vector<1x8x32xf32>
    %100 = vector.shape_cast %99 : vector<1x8x32xf32> to vector<8x32xf32>
    %101 = vector.shape_cast %98 : vector<8x32xf32> to vector<1x8x32xf32>
    tpu.vector_store %arg5[%c0_63, %c0_64, %c0_65], %101 {strides = array<i32>} : memref<1x8x32xf32, #tpu.memory_space<vmem>>, vector<1x8x32xf32>,
    return
  }
  func.func @transform_0(%arg0: i32) -> (i32, i32, i32) {
    %c0_i32 = arith.constant 0 : i32
    %c0_i32_0 = arith.constant 0 : i32
    %c0_i32_1 = arith.constant 0 : i32
    return %arg0, %c0_i32, %c0_i32_0 : i32, i32, i32
  }
  func.func @transform_1(%arg0: i32) -> (i32, i32, i32) {
    %c0_i32 = arith.constant 0 : i32
    %c0_i32_0 = arith.constant 0 : i32
    %c0_i32_1 = arith.constant 0 : i32
    return %arg0, %c0_i32, %c0_i32_0 : i32, i32, i32
  }
  func.func @transform_2(%arg0: i32) -> (i32, i32) {
    %c0_i32 = arith.constant 0 : i32
    %c0_i32_0 = arith.constant 0 : i32
    %c0_i32_1 = arith.constant 0 : i32
    return %c0_i32, %c0_i32_0 : i32, i32
  }
  func.func @transform_3(%arg0: i32) -> (i32, i32) {
    %c0_i32 = arith.constant 0 : i32
    %c0_i32_0 = arith.constant 0 : i32
    %c0_i32_1 = arith.constant 0 : i32
    return %c0_i32, %c0_i32_0 : i32, i32
  }
  func.func @transform_4(%arg0: i32) -> (i32, i32, i32) {
    %c0_i32 = arith.constant 0 : i32
    %c0_i32_0 = arith.constant 0 : i32
    %c0_i32_1 = arith.constant 0 : i32
    return %arg0, %c0_i32, %c0_i32_0 : i32, i32, i32
  }
}

module attributes {stable_mosaic.version = 11 : i64} {
  func.func @kern(%arg0: i32, %arg1: i32, %arg2: memref<16x32xf32, #tpu.memory_space<vmem>>, %arg3: memref<1x32xf32, #tpu.memory_space<vmem>>, %arg4: memref<1x32xf32, #tpu.memory_space<vmem>>, %arg5: memref<32x96xf32, #tpu.memory_space<vmem>>, %arg6: memref<1x96xf32, #tpu.memory_space<vmem>>, %arg7: memref<16x96xf32, #tpu.memory_space<vmem>>, %arg8: memref<16x32xf32, #tpu.memory_space<vmem>>) attributes {dimension_semantics = [#tpu.dimension_semantics<parallel>, #tpu.dimension_semantics<arbitrary>], iteration_bounds = array<i64: 1, 1>, scalar_prefetch = 0 : i64, scratch_operands = 1 : i64, tpu.core_type = #tpu.core_type<tc>, window_params = [{transform_indices = @transform_0, window_bounds = array<i64: 16, 32>}, {pipeline_mode = #tpu.pipeline_mode<synchronous>, transform_indices = @transform_1, window_bounds = array<i64: 1, 32>}, {pipeline_mode = #tpu.pipeline_mode<synchronous>, transform_indices = @transform_2, window_bounds = array<i64: 1, 32>}, {transform_indices = @transform_3, window_bounds = array<i64: 32, 96>}, {transform_indices = @transform_4, window_bounds = array<i64: 1, 96>}, {transform_indices = @transform_5, window_bounds = array<i64: 16, 96>}]} {
    %c0_i32 = arith.constant 0 : i32
    %0 = arith.cmpi eq, %arg1, %c0_i32 : i32
    %1 = arith.extui %0 : i1 to i32
    %c0_i32_0 = arith.constant 0 : i32
    %2 = arith.cmpi ne, %1, %c0_i32_0 : i32
    scf.if %2 {
      %c0_8 = arith.constant 0 : index
      %c0_9 = arith.constant 0 : index
      %10 = vector.load %arg2[%c0_8, %c0_9] : memref<16x32xf32, #tpu.memory_space<vmem>>, vector<16x32xf32>
      %cst_10 = arith.constant dense<0.000000e+00> : vector<16xf32>
      %11 = vector.multi_reduction <add>, %10, %cst_10 [1] : vector<16x32xf32> to vector<16xf32>
      %12 = vector.shape_cast %11 : vector<16xf32> to vector<16x1xf32>
      %cst_11 = arith.constant 3.200000e+01 : f32
      %13 = vector.broadcast %cst_11 : f32 to vector<16x1xf32>
      %14 = arith.divf %12, %13 : vector<16x1xf32>
      %15 = vector.broadcast %14 : vector<16x1xf32> to vector<16x32xf32>
      %16 = arith.subf %10, %15 : vector<16x32xf32>
      %17 = arith.mulf %16, %16 : vector<16x32xf32>
      %cst_12 = arith.constant dense<0.000000e+00> : vector<16xf32>
      %18 = vector.multi_reduction <add>, %17, %cst_12 [1] : vector<16x32xf32> to vector<16xf32>
      %19 = vector.shape_cast %18 : vector<16xf32> to vector<16x1xf32>
      %cst_13 = arith.constant 3.200000e+01 : f32
      %20 = vector.broadcast %cst_13 : f32 to vector<16x1xf32>
      %21 = arith.divf %19, %20 : vector<16x1xf32>
      %22 = vector.broadcast %14 : vector<16x1xf32> to vector<16x32xf32>
      %23 = arith.subf %10, %22 : vector<16x32xf32>
      %cst_14 = arith.constant 9.99999974E-6 : f32
      %24 = vector.broadcast %cst_14 : f32 to vector<16x1xf32>
      %25 = arith.addf %21, %24 : vector<16x1xf32>
      %26 = math.rsqrt %25 : vector<16x1xf32>
      %27 = vector.broadcast %26 : vector<16x1xf32> to vector<16x32xf32>
      %28 = arith.mulf %23, %27 : vector<16x32xf32>
      %c0_15 = arith.constant 0 : index
      %c0_16 = arith.constant 0 : index
      %29 = vector.load %arg3[%c0_15, %c0_16] : memref<1x32xf32, #tpu.memory_space<vmem>>, vector<1x32xf32>
      %30 = vector.broadcast %29 : vector<1x32xf32> to vector<16x32xf32>
      %31 = arith.mulf %28, %30 : vector<16x32xf32>
      %c0_17 = arith.constant 0 : index
      %c0_18 = arith.constant 0 : index
      %32 = vector.load %arg4[%c0_17, %c0_18] : memref<1x32xf32, #tpu.memory_space<vmem>>, vector<1x32xf32>
      %33 = vector.broadcast %32 : vector<1x32xf32> to vector<16x32xf32>
      %34 = arith.addf %31, %33 : vector<16x32xf32>
      %c0_19 = arith.constant 0 : index
      %c0_20 = arith.constant 0 : index
      %35 = vector.load %arg8[%c0_19, %c0_20] : memref<16x32xf32, #tpu.memory_space<vmem>>, vector<16x32xf32>
      tpu.vector_store %arg8[%c0_19, %c0_20], %34 {strides = array<i32>} : memref<16x32xf32, #tpu.memory_space<vmem>>, vector<16x32xf32>,
    } else {
    }
    %c0 = arith.constant 0 : index
    %c0_1 = arith.constant 0 : index
    %3 = vector.load %arg8[%c0, %c0_1] : memref<16x32xf32, #tpu.memory_space<vmem>>, vector<16x32xf32>
    %c0_2 = arith.constant 0 : index
    %c0_3 = arith.constant 0 : index
    %4 = vector.load %arg5[%c0_2, %c0_3] : memref<32x96xf32, #tpu.memory_space<vmem>>, vector<32x96xf32>
    %cst = arith.constant dense<0.000000e+00> : vector<16x96xf32>
    %5 = tpu.matmul %3, %4, %cst {dimension_numbers = #tpu.dot_dimension_numbers<[1], [0], [0], [1], [0, 0, 1, 1], [], []>} : vector<16x32xf32>, vector<32x96xf32>, vector<16x96xf32> -> vector<16x96xf32>
    %c0_4 = arith.constant 0 : index
    %c0_5 = arith.constant 0 : index
    %6 = vector.load %arg6[%c0_4, %c0_5] : memref<1x96xf32, #tpu.memory_space<vmem>>, vector<1x96xf32>
    %7 = vector.broadcast %6 : vector<1x96xf32> to vector<16x96xf32>
    %8 = arith.addf %5, %7 : vector<16x96xf32>
    %c0_6 = arith.constant 0 : index
    %c0_7 = arith.constant 0 : index
    %9 = vector.load %arg7[%c0_6, %c0_7] : memref<16x96xf32, #tpu.memory_space<vmem>>, vector<16x96xf32>
    tpu.vector_store %arg7[%c0_6, %c0_7], %8 {strides = array<i32>} : memref<16x96xf32, #tpu.memory_space<vmem>>, vector<16x96xf32>,
    return
  }
  func.func @transform_0(%arg0: i32, %arg1: i32) -> (i32, i32) {
    %c0_i32 = arith.constant 0 : i32
    %c0_i32_0 = arith.constant 0 : i32
    return %arg0, %c0_i32 : i32, i32
  }
  func.func @transform_1(%arg0: i32, %arg1: i32) -> (i32, i32) {
    %c0_i32 = arith.constant 0 : i32
    %c0_i32_0 = arith.constant 0 : i32
    %c0_i32_1 = arith.constant 0 : i32
    return %c0_i32, %c0_i32_0 : i32, i32
  }
  func.func @transform_2(%arg0: i32, %arg1: i32) -> (i32, i32) {
    %c0_i32 = arith.constant 0 : i32
    %c0_i32_0 = arith.constant 0 : i32
    %c0_i32_1 = arith.constant 0 : i32
    return %c0_i32, %c0_i32_0 : i32, i32
  }
  func.func @transform_3(%arg0: i32, %arg1: i32) -> (i32, i32) {
    %c0_i32 = arith.constant 0 : i32
    %c0_i32_0 = arith.constant 0 : i32
    return %c0_i32, %arg1 : i32, i32
  }
  func.func @transform_4(%arg0: i32, %arg1: i32) -> (i32, i32) {
    %c0_i32 = arith.constant 0 : i32
    %c0_i32_0 = arith.constant 0 : i32
    return %c0_i32, %arg1 : i32, i32
  }
  func.func @transform_5(%arg0: i32, %arg1: i32) -> (i32, i32) {
    %c0_i32 = arith.constant 0 : i32
    return %arg0, %arg1 : i32, i32
  }
}

module attributes {stable_mosaic.version = 11 : i64} {
  func.func @_mlp_kernel(%arg0: i32, %arg1: i32, %arg2: memref<16x32xf32, #tpu.memory_space<vmem>>, %arg3: memref<1x32xf32, #tpu.memory_space<vmem>>, %arg4: memref<1x32xf32, #tpu.memory_space<vmem>>, %arg5: memref<32x128xf32, #tpu.memory_space<vmem>>, %arg6: memref<1x128xf32, #tpu.memory_space<vmem>>, %arg7: memref<128x32xf32, #tpu.memory_space<vmem>>, %arg8: memref<1x32xf32, #tpu.memory_space<vmem>>, %arg9: memref<16x32xf32, #tpu.memory_space<vmem>>, %arg10: memref<16x32xf32, #tpu.memory_space<vmem>>, %arg11: memref<16x32xf32, #tpu.memory_space<vmem>>) attributes {dimension_semantics = [#tpu.dimension_semantics<parallel>, #tpu.dimension_semantics<arbitrary>], iteration_bounds = array<i64: 1, 1>, scalar_prefetch = 0 : i64, scratch_operands = 2 : i64, tpu.core_type = #tpu.core_type<tc>, window_params = [{transform_indices = @transform_0, window_bounds = array<i64: 16, 32>}, {pipeline_mode = #tpu.pipeline_mode<synchronous>, transform_indices = @transform_1, window_bounds = array<i64: 1, 32>}, {pipeline_mode = #tpu.pipeline_mode<synchronous>, transform_indices = @transform_2, window_bounds = array<i64: 1, 32>}, {transform_indices = @transform_3, window_bounds = array<i64: 32, 128>}, {transform_indices = @transform_4, window_bounds = array<i64: 1, 128>}, {transform_indices = @transform_5, window_bounds = array<i64: 128, 32>}, {pipeline_mode = #tpu.pipeline_mode<synchronous>, transform_indices = @transform_6, window_bounds = array<i64: 1, 32>}, {transform_indices = @transform_7, window_bounds = array<i64: 16, 32>}]} {
    %c0_i32 = arith.constant 0 : i32
    %0 = arith.cmpi eq, %arg1, %c0_i32 : i32
    %1 = arith.extui %0 : i1 to i32
    %c0_i32_0 = arith.constant 0 : i32
    %2 = arith.cmpi ne, %1, %c0_i32_0 : i32
    scf.if %2 {
      %c0_17 = arith.constant 0 : index
      %c0_18 = arith.constant 0 : index
      %25 = vector.load %arg2[%c0_17, %c0_18] : memref<16x32xf32, #tpu.memory_space<vmem>>, vector<16x32xf32>
      %cst_19 = arith.constant dense<0.000000e+00> : vector<16xf32>
      %26 = vector.multi_reduction <add>, %25, %cst_19 [1] : vector<16x32xf32> to vector<16xf32>
      %27 = vector.shape_cast %26 : vector<16xf32> to vector<16x1xf32>
      %cst_20 = arith.constant 3.200000e+01 : f32
      %28 = vector.broadcast %cst_20 : f32 to vector<16x1xf32>
      %29 = arith.divf %27, %28 : vector<16x1xf32>
      %30 = vector.broadcast %29 : vector<16x1xf32> to vector<16x32xf32>
      %31 = arith.subf %25, %30 : vector<16x32xf32>
      %32 = arith.mulf %31, %31 : vector<16x32xf32>
      %cst_21 = arith.constant dense<0.000000e+00> : vector<16xf32>
      %33 = vector.multi_reduction <add>, %32, %cst_21 [1] : vector<16x32xf32> to vector<16xf32>
      %34 = vector.shape_cast %33 : vector<16xf32> to vector<16x1xf32>
      %cst_22 = arith.constant 3.200000e+01 : f32
      %35 = vector.broadcast %cst_22 : f32 to vector<16x1xf32>
      %36 = arith.divf %34, %35 : vector<16x1xf32>
      %37 = vector.broadcast %29 : vector<16x1xf32> to vector<16x32xf32>
      %38 = arith.subf %25, %37 : vector<16x32xf32>
      %cst_23 = arith.constant 9.99999974E-6 : f32
      %39 = vector.broadcast %cst_23 : f32 to vector<16x1xf32>
      %40 = arith.addf %36, %39 : vector<16x1xf32>
      %41 = math.rsqrt %40 : vector<16x1xf32>
      %42 = vector.broadcast %41 : vector<16x1xf32> to vector<16x32xf32>
      %43 = arith.mulf %38, %42 : vector<16x32xf32>
      %c0_24 = arith.constant 0 : index
      %c0_25 = arith.constant 0 : index
      %44 = vector.load %arg3[%c0_24, %c0_25] : memref<1x32xf32, #tpu.memory_space<vmem>>, vector<1x32xf32>
      %45 = vector.broadcast %44 : vector<1x32xf32> to vector<16x32xf32>
      %46 = arith.mulf %43, %45 : vector<16x32xf32>
      %c0_26 = arith.constant 0 : index
      %c0_27 = arith.constant 0 : index
      %47 = vector.load %arg4[%c0_26, %c0_27] : memref<1x32xf32, #tpu.memory_space<vmem>>, vector<1x32xf32>
      %48 = vector.broadcast %47 : vector<1x32xf32> to vector<16x32xf32>
      %49 = arith.addf %46, %48 : vector<16x32xf32>
      %c0_28 = arith.constant 0 : index
      %c0_29 = arith.constant 0 : index
      %50 = vector.load %arg10[%c0_28, %c0_29] : memref<16x32xf32, #tpu.memory_space<vmem>>, vector<16x32xf32>
      tpu.vector_store %arg10[%c0_28, %c0_29], %49 {strides = array<i32>} : memref<16x32xf32, #tpu.memory_space<vmem>>, vector<16x32xf32>,
      %cst_30 = arith.constant 0.000000e+00 : f32
      %51 = vector.broadcast %cst_30 : f32 to vector<16x32xf32>
      %c0_31 = arith.constant 0 : index
      %c0_32 = arith.constant 0 : index
      %52 = vector.load %arg11[%c0_31, %c0_32] : memref<16x32xf32, #tpu.memory_space<vmem>>, vector<16x32xf32>
      tpu.vector_store %arg11[%c0_31, %c0_32], %51 {strides = array<i32>} : memref<16x32xf32, #tpu.memory_space<vmem>>, vector<16x32xf32>,
    } else {
    }
    %c0 = arith.constant 0 : index
    %c0_1 = arith.constant 0 : index
    %3 = vector.load %arg10[%c0, %c0_1] : memref<16x32xf32, #tpu.memory_space<vmem>>, vector<16x32xf32>
    %c0_2 = arith.constant 0 : index
    %c0_3 = arith.constant 0 : index
    %4 = vector.load %arg5[%c0_2, %c0_3] : memref<32x128xf32, #tpu.memory_space<vmem>>, vector<32x128xf32>
    %cst = arith.constant dense<0.000000e+00> : vector<16x128xf32>
    %5 = tpu.matmul %3, %4, %cst {dimension_numbers = #tpu.dot_dimension_numbers<[1], [0], [0], [1], [0, 0, 1, 1], [], []>} : vector<16x32xf32>, vector<32x128xf32>, vector<16x128xf32> -> vector<16x128xf32>
    %c0_4 = arith.constant 0 : index
    %c0_5 = arith.constant 0 : index
    %6 = vector.load %arg6[%c0_4, %c0_5] : memref<1x128xf32, #tpu.memory_space<vmem>>, vector<1x128xf32>
    %7 = vector.broadcast %6 : vector<1x128xf32> to vector<16x128xf32>
    %8 = arith.addf %5, %7 : vector<16x128xf32>
    %cst_6 = arith.constant 1.702000e+00 : f32
    %9 = vector.broadcast %cst_6 : f32 to vector<16x128xf32>
    %10 = arith.mulf %9, %8 : vector<16x128xf32>
    %11 = arith.negf %10 : vector<16x128xf32>
    %12 = math.exp %11 : vector<16x128xf32>
    %cst_7 = arith.constant 1.000000e+00 : f32
    %13 = vector.broadcast %cst_7 : f32 to vector<16x128xf32>
    %14 = arith.addf %13, %12 : vector<16x128xf32>
    %15 = arith.divf %13, %14 : vector<16x128xf32>
    %16 = arith.mulf %8, %15 : vector<16x128xf32>
    %c0_8 = arith.constant 0 : index
    %c0_9 = arith.constant 0 : index
    %17 = vector.load %arg11[%c0_8, %c0_9] : memref<16x32xf32, #tpu.memory_space<vmem>>, vector<16x32xf32>
    %c0_10 = arith.constant 0 : index
    %c0_11 = arith.constant 0 : index
    %18 = vector.load %arg7[%c0_10, %c0_11] : memref<128x32xf32, #tpu.memory_space<vmem>>, vector<128x32xf32>
    %cst_12 = arith.constant dense<0.000000e+00> : vector<16x32xf32>
    %19 = tpu.matmul %16, %18, %cst_12 {dimension_numbers = #tpu.dot_dimension_numbers<[1], [0], [0], [1], [0, 0, 1, 1], [], []>} : vector<16x128xf32>, vector<128x32xf32>, vector<16x32xf32> -> vector<16x32xf32>
    %20 = arith.addf %17, %19 : vector<16x32xf32>
    %c0_13 = arith.constant 0 : index
    %c0_14 = arith.constant 0 : index
    %21 = vector.load %arg11[%c0_13, %c0_14] : memref<16x32xf32, #tpu.memory_space<vmem>>, vector<16x32xf32>
    tpu.vector_store %arg11[%c0_13, %c0_14], %20 {strides = array<i32>} : memref<16x32xf32, #tpu.memory_space<vmem>>, vector<16x32xf32>,
    %c0_i32_15 = arith.constant 0 : i32
    %22 = arith.cmpi eq, %arg1, %c0_i32_15 : i32
    %23 = arith.extui %22 : i1 to i32
    %c0_i32_16 = arith.constant 0 : i32
    %24 = arith.cmpi ne, %23, %c0_i32_16 : i32
    scf.if %24 {
      %c0_17 = arith.constant 0 : index
      %c0_18 = arith.constant 0 : index
      %25 = vector.load %arg11[%c0_17, %c0_18] : memref<16x32xf32, #tpu.memory_space<vmem>>, vector<16x32xf32>
      %c0_19 = arith.constant 0 : index
      %c0_20 = arith.constant 0 : index
      %26 = vector.load %arg8[%c0_19, %c0_20] : memref<1x32xf32, #tpu.memory_space<vmem>>, vector<1x32xf32>
      %27 = vector.broadcast %26 : vector<1x32xf32> to vector<16x32xf32>
      %28 = arith.addf %25, %27 : vector<16x32xf32>
      %c0_21 = arith.constant 0 : index
      %c0_22 = arith.constant 0 : index
      %29 = vector.load %arg2[%c0_21, %c0_22] : memref<16x32xf32, #tpu.memory_space<vmem>>, vector<16x32xf32>
      %30 = arith.addf %28, %29 : vector<16x32xf32>
      %c0_23 = arith.constant 0 : index
      %c0_24 = arith.constant 0 : index
      %31 = vector.load %arg9[%c0_23, %c0_24] : memref<16x32xf32, #tpu.memory_space<vmem>>, vector<16x32xf32>
      tpu.vector_store %arg9[%c0_23, %c0_24], %30 {strides = array<i32>} : memref<16x32xf32, #tpu.memory_space<vmem>>, vector<16x32xf32>,
    } else {
    }
    return
  }
  func.func @transform_0(%arg0: i32, %arg1: i32) -> (i32, i32) {
    %c0_i32 = arith.constant 0 : i32
    %c0_i32_0 = arith.constant 0 : i32
    return %arg0, %c0_i32 : i32, i32
  }
  func.func @transform_1(%arg0: i32, %arg1: i32) -> (i32, i32) {
    %c0_i32 = arith.constant 0 : i32
    %c0_i32_0 = arith.constant 0 : i32
    %c0_i32_1 = arith.constant 0 : i32
    return %c0_i32, %c0_i32_0 : i32, i32
  }
  func.func @transform_2(%arg0: i32, %arg1: i32) -> (i32, i32) {
    %c0_i32 = arith.constant 0 : i32
    %c0_i32_0 = arith.constant 0 : i32
    %c0_i32_1 = arith.constant 0 : i32
    return %c0_i32, %c0_i32_0 : i32, i32
  }
  func.func @transform_3(%arg0: i32, %arg1: i32) -> (i32, i32) {
    %c0_i32 = arith.constant 0 : i32
    %c0_i32_0 = arith.constant 0 : i32
    return %c0_i32, %arg1 : i32, i32
  }
  func.func @transform_4(%arg0: i32, %arg1: i32) -> (i32, i32) {
    %c0_i32 = arith.constant 0 : i32
    %c0_i32_0 = arith.constant 0 : i32
    return %c0_i32, %arg1 : i32, i32
  }
  func.func @transform_5(%arg0: i32, %arg1: i32) -> (i32, i32) {
    %c0_i32 = arith.constant 0 : i32
    %c0_i32_0 = arith.constant 0 : i32
    return %arg1, %c0_i32 : i32, i32
  }
  func.func @transform_6(%arg0: i32, %arg1: i32) -> (i32, i32) {
    %c0_i32 = arith.constant 0 : i32
    %c0_i32_0 = arith.constant 0 : i32
    %c0_i32_1 = arith.constant 0 : i32
    return %c0_i32, %c0_i32_0 : i32, i32
  }
  func.func @transform_7(%arg0: i32, %arg1: i32) -> (i32, i32) {
    %c0_i32 = arith.constant 0 : i32
    %c0_i32_0 = arith.constant 0 : i32
    return %arg0, %c0_i32 : i32, i32
  }
}

module attributes {stable_mosaic.version = 11 : i64} {
  func.func @kern(%arg0: i32, %arg1: i32, %arg2: memref<8x32xf32, #tpu.memory_space<vmem>>, %arg3: memref<1x32xf32, #tpu.memory_space<vmem>>, %arg4: memref<1x32xf32, #tpu.memory_space<vmem>>, %arg5: memref<32x32xf32, #tpu.memory_space<vmem>>, %arg6: memref<8x32xf32, #tpu.memory_space<vmem>>, %arg7: memref<8x32xf32, #tpu.memory_space<vmem>>) attributes {dimension_semantics = [#tpu.dimension_semantics<parallel>, #tpu.dimension_semantics<arbitrary>], iteration_bounds = array<i64: 1, 1>, scalar_prefetch = 0 : i64, scratch_operands = 1 : i64, tpu.core_type = #tpu.core_type<tc>, window_params = [{transform_indices = @transform_0, window_bounds = array<i64: 8, 32>}, {pipeline_mode = #tpu.pipeline_mode<synchronous>, transform_indices = @transform_1, window_bounds = array<i64: 1, 32>}, {pipeline_mode = #tpu.pipeline_mode<synchronous>, transform_indices = @transform_2, window_bounds = array<i64: 1, 32>}, {transform_indices = @transform_3, window_bounds = array<i64: 32, 32>}, {transform_indices = @transform_4, window_bounds = array<i64: 8, 32>}]} {
    %c0_i32 = arith.constant 0 : i32
    %0 = arith.cmpi eq, %arg1, %c0_i32 : i32
    %1 = arith.extui %0 : i1 to i32
    %c0_i32_0 = arith.constant 0 : i32
    %2 = arith.cmpi ne, %1, %c0_i32_0 : i32
    scf.if %2 {
      %c0_6 = arith.constant 0 : index
      %c0_7 = arith.constant 0 : index
      %7 = vector.load %arg2[%c0_6, %c0_7] : memref<8x32xf32, #tpu.memory_space<vmem>>, vector<8x32xf32>
      %cst_8 = arith.constant dense<0.000000e+00> : vector<8xf32>
      %8 = vector.multi_reduction <add>, %7, %cst_8 [1] : vector<8x32xf32> to vector<8xf32>
      %9 = vector.shape_cast %8 : vector<8xf32> to vector<8x1xf32>
      %cst_9 = arith.constant 3.200000e+01 : f32
      %10 = vector.broadcast %cst_9 : f32 to vector<8x1xf32>
      %11 = arith.divf %9, %10 : vector<8x1xf32>
      %12 = vector.broadcast %11 : vector<8x1xf32> to vector<8x32xf32>
      %13 = arith.subf %7, %12 : vector<8x32xf32>
      %14 = arith.mulf %13, %13 : vector<8x32xf32>
      %cst_10 = arith.constant dense<0.000000e+00> : vector<8xf32>
      %15 = vector.multi_reduction <add>, %14, %cst_10 [1] : vector<8x32xf32> to vector<8xf32>
      %16 = vector.shape_cast %15 : vector<8xf32> to vector<8x1xf32>
      %cst_11 = arith.constant 3.200000e+01 : f32
      %17 = vector.broadcast %cst_11 : f32 to vector<8x1xf32>
      %18 = arith.divf %16, %17 : vector<8x1xf32>
      %19 = vector.broadcast %11 : vector<8x1xf32> to vector<8x32xf32>
      %20 = arith.subf %7, %19 : vector<8x32xf32>
      %cst_12 = arith.constant 9.99999974E-6 : f32
      %21 = vector.broadcast %cst_12 : f32 to vector<8x1xf32>
      %22 = arith.addf %18, %21 : vector<8x1xf32>
      %23 = math.rsqrt %22 : vector<8x1xf32>
      %24 = vector.broadcast %23 : vector<8x1xf32> to vector<8x32xf32>
      %25 = arith.mulf %20, %24 : vector<8x32xf32>
      %c0_13 = arith.constant 0 : index
      %c0_14 = arith.constant 0 : index
      %26 = vector.load %arg3[%c0_13, %c0_14] : memref<1x32xf32, #tpu.memory_space<vmem>>, vector<1x32xf32>
      %27 = vector.broadcast %26 : vector<1x32xf32> to vector<8x32xf32>
      %28 = arith.mulf %25, %27 : vector<8x32xf32>
      %c0_15 = arith.constant 0 : index
      %c0_16 = arith.constant 0 : index
      %29 = vector.load %arg4[%c0_15, %c0_16] : memref<1x32xf32, #tpu.memory_space<vmem>>, vector<1x32xf32>
      %30 = vector.broadcast %29 : vector<1x32xf32> to vector<8x32xf32>
      %31 = arith.addf %28, %30 : vector<8x32xf32>
      %c0_17 = arith.constant 0 : index
      %c0_18 = arith.constant 0 : index
      %32 = vector.load %arg7[%c0_17, %c0_18] : memref<8x32xf32, #tpu.memory_space<vmem>>, vector<8x32xf32>
      tpu.vector_store %arg7[%c0_17, %c0_18], %31 {strides = array<i32>} : memref<8x32xf32, #tpu.memory_space<vmem>>, vector<8x32xf32>,
    } else {
    }
    %c0 = arith.constant 0 : index
    %c0_1 = arith.constant 0 : index
    %3 = vector.load %arg7[%c0, %c0_1] : memref<8x32xf32, #tpu.memory_space<vmem>>, vector<8x32xf32>
    %c0_2 = arith.constant 0 : index
    %c0_3 = arith.constant 0 : index
    %4 = vector.load %arg5[%c0_2, %c0_3] : memref<32x32xf32, #tpu.memory_space<vmem>>, vector<32x32xf32>
    %cst = arith.constant dense<0.000000e+00> : vector<8x32xf32>
    %5 = tpu.matmul %3, %4, %cst {dimension_numbers = #tpu.dot_dimension_numbers<[1], [0], [0], [1], [0, 0, 1, 1], [], []>} : vector<8x32xf32>, vector<32x32xf32>, vector<8x32xf32> -> vector<8x32xf32>
    %c0_4 = arith.constant 0 : index
    %c0_5 = arith.constant 0 : index
    %6 = vector.load %arg6[%c0_4, %c0_5] : memref<8x32xf32, #tpu.memory_space<vmem>>, vector<8x32xf32>
    tpu.vector_store %arg6[%c0_4, %c0_5], %5 {strides = array<i32>} : memref<8x32xf32, #tpu.memory_space<vmem>>, vector<8x32xf32>,
    return
  }
  func.func @transform_0(%arg0: i32, %arg1: i32) -> (i32, i32) {
    %c0_i32 = arith.constant 0 : i32
    %c0_i32_0 = arith.constant 0 : i32
    return %arg0, %c0_i32 : i32, i32
  }
  func.func @transform_1(%arg0: i32, %arg1: i32) -> (i32, i32) {
    %c0_i32 = arith.constant 0 : i32
    %c0_i32_0 = arith.constant 0 : i32
    %c0_i32_1 = arith.constant 0 : i32
    return %c0_i32, %c0_i32_0 : i32, i32
  }
  func.func @transform_2(%arg0: i32, %arg1: i32) -> (i32, i32) {
    %c0_i32 = arith.constant 0 : i32
    %c0_i32_0 = arith.constant 0 : i32
    %c0_i32_1 = arith.constant 0 : i32
    return %c0_i32, %c0_i32_0 : i32, i32
  }
  func.func @transform_3(%arg0: i32, %arg1: i32) -> (i32, i32) {
    %c0_i32 = arith.constant 0 : i32
    %c0_i32_0 = arith.constant 0 : i32
    return %c0_i32, %arg1 : i32, i32
  }
  func.func @transform_4(%arg0: i32, %arg1: i32) -> (i32, i32) {
    %c0_i32 = arith.constant 0 : i32
    return %arg0, %arg1 : i32, i32
  }
}

</mosaic_0001>

<bundles_post_ra>
// kernel: text_encoder_forward.7
= control target key start
LH: loop header
LB: loop body
LE: loop exit
PB: predicated region body
PF: predicated region fallthrough
CT: control target
= control target key end

     0   :  { %vm26_vm0 = vcmask 261120   ;;  %vm169_vm1 = vcmask 785408   ;;  %s281_s0 = inlined_call_operand.vmem [shape: f32[16,32], index: 0, kind: input, shape index: {}]   ;;  %s282_s3 = inlined_call_operand.vmem [shape: f32[32,96], index: 3, kind: input, shape index: {}]   ;;  %s283_s1 = inlined_call_operand.vmem [shape: f32[1,32], index: 1, kind: input, shape index: {}]   ;;  %s284_s2 = inlined_call_operand.vmem [shape: f32[1,32], index: 2, kind: input, shape index: {}]   ;;  %s285_s4 = inlined_call_operand.vmem [shape: f32[1,96], index: 4, kind: input, shape index: {}]   ;;  %s286_s5 = inlined_call_operand.vmem [shape: f32[16,96], index: 5, kind: output, shape index: {}]  }
   0x1   :  { %v24_v0 = vld [vmem:[%s281_s0] sm:$0xff]  ;;  %v25_v1 = vld [vmem:[%s281_s0 + $0x8] sm:$0xff]  ;;  %v78_v17 = vld [vmem:[%s282_s3 + $0x10] sm:$0xff] }
   0x2   :  { %v27_v2 = vsel %vm26_vm0, %v24_v0, 0.0  ;;  %v30_v3 = vsel %vm26_vm0, %v25_v1, 0.0  ;;  %v76_v14 = vld [vmem:[%s282_s3] sm:$0xff]  ;;  %v77_v15 = vld [vmem:[%s282_s3 + $0x8] sm:$0xff]  ;;  %v79_v18 = vld [vmem:[%s282_s3 + $0x18] sm:$0xff] }
   0x3   :  { %28 = vadd.xlane.f32.xlu0 %v27_v2  ;;  %v198_v16 = vpack.c.bf16 %v77_v15, %v76_v14  ;;  %v202_v19 = vpack.c.bf16 %v79_v18, %v78_v17  ;;  %v176_v27 = vld [vmem:[%s283_s1] ss:$0 sm:$0xff] }
   0x4   :  { %v177_v29 = vld [vmem:[%s284_s2] ss:$0 sm:$0xff] }
   0x5   :  { %199 = vmatprep.subr.bf16.mxu0 %v198_v16  ;;  %v178_v38 = vld [vmem:[%s285_s4] ss:$0 sm:$0xff] }
   0x6   :  { %201 = vmatpush3.bf16.msra.mxu0 %v198_v16 }
   0x7   :  { %31 = vadd.xlane.f32.xlu0 %v30_v3  ;;  %203 = vmatprep.subr.bf16.mxu0 %v202_v19 }
   0xa   :  { %205 = vmatpush3.bf16.msra.mxu0 %v202_v19 }
  0x90   :  { %v29_v4 = vpop.xlane.xlu0 %28 }
  0x91   :  { %v34_v5 = vmul.f32 0.03125, %v29_v4 }
  0x93   :  { %v36_v6 = vsub.f32 %v24_v0, %v34_v5 }
  0x94   :  { %v32_v7 = vpop.xlane.xlu0 %31 }
  0x95   :  { %v35_v8 = vmul.f32 0.03125, %v32_v7  ;;  %v38_v9 = vmul.f32 %v36_v6, %v36_v6 }
  0x97   :  { %v37_v10 = vsub.f32 %v25_v1, %v35_v8  ;;  %v40_v11 = vsel %vm26_vm0, %v38_v9, 0.0 }
  0x98   :  { %41 = vadd.xlane.f32.xlu1 %v40_v11 }
  0x99   :  { %v39_v12 = vmul.f32 %v37_v10, %v37_v10 }
  0x9b   :  { %v43_v13 = vsel %vm26_vm0, %v39_v12, 0.0 }
  0x9c   :  { %44 = vadd.xlane.f32.xlu1 %v43_v13 }
 0x125   :  { %v42_v20 = vpop.xlane.xlu1 %41 }
 0x126   :  { %v46_v21 = vmul.f32 0.03125, %v42_v20 }
 0x128   :  { %v48_v22 = vadd.f32 1e-05, %v46_v21 }
 0x129   :  { %v45_v23 = vpop.xlane.xlu1 %44 }
 0x12a   :  { %206 = vrsqrt.f32 %v48_v22  ;;  %v47_v24 = vmul.f32 0.03125, %v45_v23 }
 0x12c   :  { %v49_v25 = vadd.f32 1e-05, %v47_v24 }
 0x12e   :  { %208 = vrsqrt.f32 %v49_v25 }
 0x134   :  { %v207_v26 = vpop.eup %206 }
 0x135   :  { %v52_v28 = vmul.f32 %v207_v26, %v36_v6 }
 0x137   :  { %v61_v30 = vmul.f32 %v176_v27, %v52_v28 }
 0x138   :  { %v209_v31 = vpop.eup %208 }
 0x139   :  { %v70_v32 = vadd.f32 %v177_v29, %v61_v30  ;;  %v53_v33 = vmul.f32 %v209_v31, %v37_v10 }
 0x13b   :  { %72 = vst.msk [vmem:[#allocation2] sm:$0xff] %vm26_vm0, %v70_v32  ;;  %v62_v34 = vmul.f32 %v176_v27, %v53_v33 }
 0x13d   :  { %v71_v35 = vadd.f32 %v177_v29, %v62_v34 }
 0x13f   :  { %73 = vst.msk [vmem:[#allocation2 + $0x8] sm:$0xff] %vm26_vm0, %v71_v35 }
 0x142   :  { %v74_v36 = vld [vmem:[#allocation2] sm:$0xff] }
 0x143   :  { %195 = vmatprep.mubr.msk.f32.mxu0 %vm26_vm0, %v74_v36 }
 0x146   :  { %v75_v37 = vld [vmem:[#allocation2 + $0x8] sm:$0xff] }
 0x147   :  { %196 = vmatmul.mubr.msk.f32.vlgmr.msra.gmra.mrb[0].mxu0 %vm26_vm0, %v75_v37 }
 0x21a   :  { %v197_v39 = vpop.f32.mrb[0].mxu0 }
 0x21b   :  { %v166_v40 = vadd.f32 %v197_v39, %v178_v38  ;;  %v160_v41 = vpop.f32.mrb[1].mxu0 }
 0x21c   :  { %v161_v42 = vadd.f32 %v178_v38, %v160_v41 }
 0x21d   :  { %171 = vst.msk [vmem:[%s286_s5 + $0x8] sm:$0xff] %vm169_vm1, %v166_v40 }
 0x21e   :  { %170 = vst.msk [vmem:[%s286_s5] sm:$0xff] %vm169_vm1, %v161_v42 }

// kernel: text_encoder_forward.8
= control target key start
LH: loop header
LB: loop body
LE: loop exit
PB: predicated region body
PF: predicated region fallthrough
CT: control target
= control target key end

     0   :  { %s1257_s15 = smov 0   ;;  %s1356_s0 = inlined_call_operand.vmem [shape: f32[2,8,96], index: 0, kind: input, shape index: {}]   ;;  %s1357_s1 = inlined_call_operand.vmem [shape: f32[2,8,32], index: 1, kind: input, shape index: {}]   ;;  %s1358_s2 = inlined_call_operand.vmem [shape: f32[32,32], index: 2, kind: input, shape index: {}]   ;;  %s1359_s3 = inlined_call_operand.vmem [shape: f32[1,32], index: 3, kind: input, shape index: {}]   ;;  %s1360_s4 = inlined_call_operand.vmem [shape: f32[2,8,32], index: 4, kind: output, shape index: {}]  }
   0x1 LB: > { %s1064_s16 = sadd.s32 4294967295, %s1213_s15   ;;  %p1068_p0 = scmp.ge.s32.totalorder %s1213_s15, 1  ;;  %s1213_s15 = sphi %s1257_s15, %s14_s15  }
   0x2   : > { %p170_p1 = scmp.lt.s32.totalorder %s1213_s15, 3 }
   0x4   : > { %p171_p2 = pnand %p1068_p0, %p170_p1 }
   0x5   : > { %p198_p3 = scmp.lt.s32.totalorder (!%p171_p2), %s1064_s16, 1  ;;  %v1215_v0 = vmov (!%p171_p2), 0.0   ;;  %vm1216_vm0 = vmmov (!%p171_p2), 0   ;;  %s1217_s21 = smov (!%p171_p2), 96   ;;  %vm221_vm1 = vcmask (!%p171_p2), 64512   ;;  %v210_v10 = vlaneseq (!%p171_p2) }
   0x6   : > { %174 = sbr.rel (%p171_p2) target bundleno = 1272 (0x4f8), region = 36  ;;  %1109 = vmatprep.subr.mxu0 (!%p171_p2), %v1215_v0  ;;  %1111 = vmatprep.mubr.msk.f32.mxu0 (!%p171_p2), %vm1216_vm0, %v1215_v0  ;;  %s1218_s22 = smov (!%p171_p2), 120   ;;  %vm558_vm3 = vcmask (!%p171_p2), 130112   ;;  %vm733_vm4 = vcmask (!%p171_p2), 195712   ;;  %vm908_vm5 = vcmask (!%p171_p2), 261312   ;;  %vm922_vm6 = vcmask (!%p171_p2), 261120  }
   0x7   : > { %1119 = vmatprep.subr.mxu1 (!%p171_p2), %v1215_v0  ;;  %1121 = vmatprep.mubr.msk.f32.mxu1 (!%p171_p2), %vm1216_vm0, %v1215_v0  ;;  %s1219_s23 = smov (!%p171_p2), 88   ;;  %s1220_s24 = smov (!%p171_p2), 80   ;;  %v211_v11 = vshrl.u32 (!%p171_p2), %v210_v10, 7  ;;  %v213_v12 = vand.u32 (!%p171_p2), 127, %v210_v10  ;;  %v914_v10 = vld [vmem:[%s1358_s2 + $0x18] sm:$0xff] (!%p171_p2) }
   0x8   : > { %s1221_s25 = smov (!%p171_p2), 112   ;;  %s1222_s26 = smov (!%p171_p2), 72  }
   0x9   : > { %s1223_s27 = smov (!%p171_p2), 104   ;;  %vm214_vm2 = vcmp.gt.s32.totalorder (!%p171_p2), %v213_v12, %v211_v11  ;;  %s1224_s28 = smov (!%p171_p2), 56   ;;  %v1229_v11 = vmov (!%p171_p2), 0.0|0.0  }
   0xa   : > { %v215_v13 = vsel (!%p171_p2), %vm214_vm2, -1e+30, %v1215_v0  ;;  %s1225_s29 = smov (!%p171_p2), 64   ;;  %s1226_s30 = smov (!%p171_p2), 48  }
   0xb   : > { %s1227_s5 = smov (!%p171_p2), 40   ;;  %s1228_s6 = smov (!%p171_p2), 8  }
   0xc   : > { %s1231_s18 = smov (!%p171_p2), 24  }
   0xd   : > { %s1362_s16 = smov (!%p198_p3, %s1064_s16), 1 }
   0xe   : > { %s1271_s17 = sshll.u32 %s1362_s16, 3  ;;  %s1230_s16 = smov 16  }
   0xf   : > { %s201_s20 = scalar_lea.vmem %s1356_s0, %s1271_s17 }
  0x10   : > { %v1277_v1 = vld [vmem:[%s201_s20] sm:$0xff] }
  0x11   : > { %219 = vrot.lane.b32.xlu0 %v1277_v1, %s1217_s21  ;;  %v217_v2 = vmul.f32 0.35355338, %v1277_v1  ;;  %s205_s21 = scalar_lea.vmem %s1357_s1, %s1271_s17 }
  0x13   : > { %388 = vrot.lane.b32.xlu1 %v217_v2, %s1218_s22 }
  0x15   : > { %391 = vrot.lane.b32.xlu0 %v1277_v1, %s1219_s23 }
  0x17   : > { %566 = vrot.lane.b32.xlu1 %v1277_v1, %s1220_s24 }
  0x19   : > { %563 = vrot.lane.b32.xlu0 %v217_v2, %s1221_s25 }
  0x1b   : > { %741 = vrot.lane.b32.xlu1 %v1277_v1, %s1222_s26  ;;  %s209_s26 = scalar_lea.vmem %s1360_s4, %s1271_s17 }
  0x1d   : > { %738 = vrot.lane.b32.xlu0 %v217_v2, %s1223_s27 }
  0x83   : > { %v220_v3 = vpop.permute.xlu0 %219 }
  0x84   : > { %1110 = vmatpush3.xpose.msk.msra.mxu0 %vm221_vm1, %v220_v3 }
  0x85   : > { %v389_v4 = vpop.permute.xlu1 %388  ;;  %1114 = vmatprep.subr.mxu0 %v1215_v0 }
  0x87   : > { %v392_v5 = vpop.permute.xlu0 %391  ;;  %1112 = vmatmul.mubr.msk.f32.vlgmr.msra.gmra.mrb[0].mxu0 %vm221_vm1, %v217_v2 }
  0x88   : > { %1120 = vmatpush3.xpose.msk.msra.mxu1 %vm221_vm1, %v392_v5  ;;  %1116 = vmatprep.mubr.msk.f32.mxu0 %vm1216_vm0, %v1215_v0 }
  0x89   : > { %v567_v6 = vpop.permute.xlu1 %566  ;;  %1129 = vmatprep.subr.mxu1 %v1215_v0 }
  0x8b   : > { %1122 = vmatmul.mubr.msk.f32.vlgmr.msra.gmra.mrb[0].mxu1 %vm221_vm1, %v389_v4  ;;  %v564_v7 = vpop.permute.xlu0 %563 }
  0x8c   : > { %1130 = vmatpush3.xpose.msk.msra.mxu1 %vm221_vm1, %v567_v6  ;;  %1131 = vmatprep.mubr.msk.f32.mxu1 %vm1216_vm0, %v1215_v0 }
  0x8d   : > { %v742_v8 = vpop.permute.xlu1 %741  ;;  %1139 = vmatprep.subr.mxu1 %v1215_v0 }
  0x8f   : > { %1132 = vmatmul.mubr.msk.f32.vlgmr.msra.gmra.mrb[2].mxu1 %vm221_vm1, %v564_v7  ;;  %v739_v9 = vpop.permute.xlu0 %738  ;;  %v911_v7 = vld [vmem:[%s1358_s2] sm:$0xff] }
  0x90   : > { %1140 = vmatpush3.xpose.msk.msra.mxu1 %vm221_vm1, %v742_v8  ;;  %1141 = vmatprep.mubr.msk.f32.mxu1 %vm1216_vm0, %v1215_v0  ;;  %v912_v8 = vld [vmem:[%s1358_s2 + $0x8] sm:$0xff] }
  0x91   : > { %1160 = vmatprep.subr.bf16.mxu1 %v1229_v11 }
  0x93   : > { %1142 = vmatmul.mubr.msk.f32.vlgmr.msra.gmra.mrb[4].mxu1 %vm221_vm1, %v739_v9  ;;  %v913_v9 = vld [vmem:[%s1358_s2 + $0x10] sm:$0xff] }
  0x94   : > { %1157 = vmatprep.mubr.msk.f32.mxu1 %vm1216_vm0, %v1215_v0  ;;  %v1164_v12 = vpack.c.bf16 %v914_v10, %v913_v9 }
 0x15a   : > { %v293_v14 = vpop.f32.mrb[0].mxu0 }
 0x15b   : > { %v294_v15 = vadd.f32 %v293_v14, %v215_v13  ;;  %v1113_v16 = vpop.f32.mrb[1].mxu0 }
 0x15d   : > { %v297_v17 = vsel %vm221_vm1, %v294_v15, -inf }
 0x15e   : > { %v463_v18 = vpop.f32.mrb[0].mxu1  ;;  %298 = vmax.xlane.f32.xlu1 %v297_v17 }
 0x15f   : > { %v464_v19 = vadd.f32 %v463_v18, %v215_v13  ;;  %v1123_v20 = vpop.f32.mrb[1].mxu1 }
 0x161   : > { %v467_v21 = vsel %vm221_vm1, %v464_v19, -inf }
 0x162   : > { %468 = vmax.xlane.f32.xlu0 %v467_v21  ;;  %v638_v22 = vpop.f32.mrb[2].mxu1  ;;  %v1084_v21 = vld [vmem:[%s1359_s3] ss:$0 sm:$0xff] }
 0x163   : > { %v639_v23 = vadd.f32 %v638_v22, %v215_v13  ;;  %v1133_v24 = vpop.f32.mrb[3].mxu1 }
 0x165   : > { %v642_v25 = vsel %vm221_vm1, %v639_v23, -inf }
 0x166   : > { %643 = vmax.xlane.f32.xlu0 %v642_v25  ;;  %v813_v26 = vpop.f32.mrb[4].mxu1 }
 0x167   : > { %v814_v27 = vadd.f32 %v813_v26, %v215_v13  ;;  %v1143_v28 = vpop.f32.mrb[5].mxu1 }
 0x169   : > { %v817_v29 = vsel %vm221_vm1, %v814_v27, -inf }
 0x16a   : > { %818 = vmax.xlane.f32.xlu1 %v817_v29 }
 0x17b   : > { %478 = vrot.lane.b32.xlu1 %v1277_v1, %s1224_s28 }
 0x1eb   : > { %v299_v30 = vpop.xlane.xlu1 %298 }
 0x1ec   : > { %v300_v31 = vsub.f32 %v294_v15, %v299_v30 }
 0x1ee   : > { %v301_v32 = vmul.f32 1.442695, %v300_v31 }
 0x1ef   : > { %v469_v33 = vpop.xlane.xlu0 %468 }
 0x1f0   : > { %1191 = vpow2.f32 %v301_v32  ;;  %v470_v34 = vsub.f32 %v464_v19, %v469_v33 }
 0x1f2   : > { %v471_v35 = vmul.f32 1.442695, %v470_v34 }
 0x1f3   : > { %v644_v45 = vpop.xlane.xlu0 %643 }
 0x1f4   : > { %1193 = vpow2.f32 %v471_v35  ;;  %v645_v46 = vsub.f32 %v639_v23, %v644_v45  ;;  %v996_v23 = vld [vmem:[%s205_s21] sm:$0xff] }
 0x1f6   : > { %v646_v47 = vmul.f32 1.442695, %v645_v46 }
 0x1f7   : > { %v819_v36 = vpop.xlane.xlu1 %818 }
 0x1f8   : > { %v820_v37 = vsub.f32 %v814_v27, %v819_v36 }
 0x1fa   : > { %v1192_v38 = vpop.eup %1191  ;;  %v821_v39 = vmul.f32 1.442695, %v820_v37 }
 0x1fb   : > { %v303_v40 = vsel %vm221_vm1, %v1192_v38, 0.0  ;;  %v479_v50 = vpop.permute.xlu1 %478 }
 0x1fc   : > { %1195 = vpow2.f32 %v821_v39  ;;  %304 = vadd.xlane.f32.xlu0 %v303_v40 }
 0x1fd   : > { %1197 = vpow2.f32 %v646_v47 }
 0x1fe   : > { %v1194_v41 = vpop.eup %1193 }
 0x1ff   : > { %v473_v42 = vsel %vm221_vm1, %v1194_v41, 0.0 }
 0x200   : > { %474 = vadd.xlane.f32.xlu1 %v473_v42 }
 0x206   : > { %v1196_v43 = vpop.eup %1195 }
 0x207   : > { %v823_v44 = vsel %vm221_vm1, %v1196_v43, 0.0  ;;  %v1198_v48 = vpop.eup %1197 }
 0x208   : > { %824 = vadd.xlane.f32.xlu1 %v823_v44  ;;  %v648_v49 = vsel %vm221_vm1, %v1198_v48, 0.0 }
 0x212   : > { %308 = vrot.lane.b32.xlu0 %v1277_v1, %s1225_s29 }
 0x219   : > { %653 = vrot.lane.b32.xlu1 %v1277_v1, %s1226_s30 }
 0x231   : > { %649 = vadd.xlane.f32.xlu0 %v648_v49 }
 0x247   : > { %828 = vrot.lane.b32.xlu0 %v1277_v1, %s1227_s5 }
 0x289   : > { %v305_v51 = vpop.xlane.xlu0 %304 }
 0x28a   : > { %1199 = vrcp.f32 %v305_v51 }
 0x28d   : > { %v309_v52 = vpop.permute.xlu0 %308  ;;  %v475_v53 = vpop.xlane.xlu1 %474 }
 0x28e   : > { %1201 = vrcp.f32 %v475_v53  ;;  %1115 = vmatpush3.msra.mxu0 %v309_v52 }
 0x28f   : > { %1124 = vmatprep.subr.mxu0 %v1215_v0 }
 0x294   : > { %v1200_v54 = vpop.eup %1199 }
 0x295   : > { %v307_v55 = vmul.f32 %v1200_v54, %v1192_v38  ;;  %v825_v56 = vpop.xlane.xlu1 %824 }
 0x297   : > { %1117 = vmatmul.mubr.msk.f32.vlgmr.msra.gmra.mrb[2].mxu0 %vm221_vm1, %v307_v55 }
 0x298   : > { %v1202_v57 = vpop.eup %1201  ;;  %1125 = vmatpush3.msra.mxu0 %v479_v50  ;;  %1126 = vmatprep.mubr.msk.f32.mxu0 %vm1216_vm0, %v1215_v0 }
 0x299   : > { %v477_v58 = vmul.f32 %v1202_v57, %v1194_v41  ;;  %1134 = vmatprep.subr.mxu0 %v1215_v0  ;;  %v654_v59 = vpop.permute.xlu1 %653 }
 0x29b   : > { %1127 = vmatmul.mubr.msk.f32.vlgmr.msra.gmra.mrb[4].mxu0 %vm221_vm1, %v477_v58 }
 0x29c   : > { %1135 = vmatpush3.msra.mxu0 %v654_v59  ;;  %1136 = vmatprep.mubr.msk.f32.mxu0 %vm1216_vm0, %v1215_v0 }
 0x29d   : > { %1144 = vmatprep.subr.mxu0 %v1215_v0 }
 0x2be   : > { %v650_v60 = vpop.xlane.xlu0 %649 }
 0x2bf   : > { %1203 = vrcp.f32 %v650_v60 }
 0x2c0   : > { %1205 = vrcp.f32 %v825_v56 }
 0x2c2   : > { %v829_v63 = vpop.permute.xlu0 %828 }
 0x2c9   : > { %v1204_v61 = vpop.eup %1203 }
 0x2ca   : > { %v652_v62 = vmul.f32 %v1204_v61, %v1198_v48  ;;  %v1206_v1 = vpop.eup %1205 }
 0x2cb   : > { %v827_v2 = vmul.f32 %v1206_v1, %v1196_v43 }
 0x2cc   : > { %1137 = vmatmul.mubr.msk.f32.vlgmr.msra.gmra.mrb[6].mxu0 %vm221_vm1, %v652_v62 }
 0x2cd   : > { %1145 = vmatpush3.msra.mxu0 %v829_v63  ;;  %1146 = vmatprep.mubr.msk.f32.mxu0 %vm1216_vm0, %v1215_v0  ;;  %v1161_v0 = vpack.c.bf16 %v912_v8, %v911_v7 }
 0x2cf   : > { %1162 = vmatpush3.bf16.msra.mxu1 %v1161_v0 }
 0x2d0   : > { %1147 = vmatmul.mubr.msk.f32.vlgmr.msra.gmra.mrb[8].mxu0 %vm221_vm1, %v827_v2  ;;  %1163 = vmatprep.subr.bf16.mxu1 %v1229_v11 }
 0x2d3   : > { %1165 = vmatpush3.bf16.msra.mxu1 %v1164_v12 }
 0x36a   : > { %v380_v3 = vpop.f32.mrb[2].mxu0 }
 0x36b   : > { %384 = vst.msk [vmem:[#allocation2] sm:$0xff] %vm221_vm1, %v380_v3  ;;  %v1118_v4 = vpop.f32.mrb[3].mxu0 }
 0x36e   : > { %v550_v5 = vpop.f32.mrb[4].mxu0 }
 0x36f   : > { %555 = vrot.lane.b32.xlu1 %v550_v5, %s1228_s6  ;;  %v1128_v6 = vpop.f32.mrb[5].mxu0 }
 0x39f   : > { %v725_v13 = vpop.f32.mrb[6].mxu0 }
 0x3a0   : > { %730 = vrot.lane.b32.xlu0 %v725_v13, %s1230_s16  ;;  %v1138_v14 = vpop.f32.mrb[7].mxu0 }
 0x3a3   : > { %v900_v15 = vpop.f32.mrb[8].mxu0 }
 0x3a4   : > { %905 = vrot.lane.b32.xlu1 %v900_v15, %s1231_s18  ;;  %v1148_v16 = vpop.f32.mrb[9].mxu0 }
 0x3e1   : > { %v556_v17 = vpop.permute.xlu1 %555 }
 0x3e2   : > { %559 = vst.msk [vmem:[#allocation2] sm:$0xff] %vm558_vm3, %v556_v17 }
 0x412   : > { %v731_v18 = vpop.permute.xlu0 %730 }
 0x413   : > { %734 = vst.msk [vmem:[#allocation2] sm:$0xff] %vm733_vm4, %v731_v18 }
 0x416   : > { %v906_v19 = vpop.permute.xlu1 %905 }
 0x417   : > { %909 = vst.msk [vmem:[#allocation2] sm:$0xff] %vm908_vm5, %v906_v19 }
 0x41e   : > { %v910_v20 = vld [vmem:[#allocation2] sm:$0xff] }
 0x41f   : > { %1158 = vmatmul.mubr.msk.f32.vlgmr.msra.gmra.mrb[6].mxu1 %vm922_vm6, %v910_v20 }
 0x4f2   : > { %v992_v22 = vpop.f32.mrb[6].mxu1 }
 0x4f3   : > { %v993_v24 = vadd.f32 %v1084_v21, %v992_v22  ;;  %v1159_v25 = vpop.f32.mrb[7].mxu1 }
 0x4f5   : > { %v997_v26 = vadd.f32 %v996_v23, %v993_v24 }
 0x4f7   : > { %998 = vst.msk [vmem:[%s209_s26] sm:$0xff] %vm922_vm6, %v997_v26 }
 0x4f8 PF: > { %s14_s15 = sadd.s32 1, %s1213_s15  }
 0x4f9   : > { %p11_p4 = scmp.ge.s32.totalorder %s14_s15, 4  }
 0x4fb   :  { %13 = sbr.rel (!%p11_p4) target bundleno = 1 (0x1), region = 69 }

// kernel: text_encoder_forward.9
= control target key start
LH: loop header
LB: loop body
LE: loop exit
PB: predicated region body
PF: predicated region fallthrough
CT: control target
= control target key end

     0   :  { %vm32_vm0 = vcmask 261120   ;;  %v445_v62 = vmov 0.0   ;;  %s594_s0 = inlined_call_operand.vmem [shape: f32[16,32], index: 0, kind: input, shape index: {}]   ;;  %s595_s3 = inlined_call_operand.vmem [shape: f32[32,128], index: 3, kind: input, shape index: {}]   ;;  %s596_s1 = inlined_call_operand.vmem [shape: f32[1,32], index: 1, kind: input, shape index: {}]   ;;  %s597_s2 = inlined_call_operand.vmem [shape: f32[1,32], index: 2, kind: input, shape index: {}]   ;;  %s598_s5 = inlined_call_operand.vmem [shape: f32[128,32], index: 5, kind: input, shape index: {}]   ;;  %s599_s4 = inlined_call_operand.vmem [shape: f32[1,128], index: 4, kind: input, shape index: {}]   ;;  %s600_s6 = inlined_call_operand.vmem [shape: f32[1,32], index: 6, kind: input, shape index: {}]   ;;  %s601_s7 = inlined_call_operand.vmem [shape: f32[16,32], index: 7, kind: output, shape index: {}]  }
   0x1   :  { %v489_v0 = vld [vmem:[%s594_s0] sm:$0xff]  ;;  %v494_v1 = vld [vmem:[%s594_s0 + $0x8] sm:$0xff]  ;;  %v86_v17 = vld [vmem:[%s595_s3 + $0x10] sm:$0xff]  ;;  %81 = vst.msk [vmem:[#allocation3 + $0x8] sm:$0xff] %vm32_vm0, %v445_v62 }
   0x2   :  { %v33_v2 = vsel %vm32_vm0, %v489_v0, 0.0  ;;  %v36_v3 = vsel %vm32_vm0, %v494_v1, 0.0  ;;  %v84_v14 = vld [vmem:[%s595_s3] sm:$0xff]  ;;  %v85_v15 = vld [vmem:[%s595_s3 + $0x8] sm:$0xff]  ;;  %v87_v18 = vld [vmem:[%s595_s3 + $0x18] sm:$0xff]  ;;  %80 = vst.msk [vmem:[#allocation3] sm:$0xff] %vm32_vm0, %v445_v62 }
   0x3   :  { %34 = vadd.xlane.f32.xlu0 %v33_v2  ;;  %v392_v16 = vpack.c.bf16 %v85_v15, %v84_v14  ;;  %v396_v19 = vpack.c.bf16 %v87_v18, %v86_v17  ;;  %v314_v27 = vld [vmem:[%s596_s1] ss:$0 sm:$0xff]  ;;  %v196_v39 = vld [vmem:[%s598_s5 + $0x8] sm:$0xff]  ;;  %v197_v41 = vld [vmem:[%s598_s5 + $0x10] sm:$0xff] }
   0x4   :  { %v315_v29 = vld [vmem:[%s597_s2] ss:$0 sm:$0xff]  ;;  %v198_v42 = vld [vmem:[%s598_s5 + $0x18] sm:$0xff]  ;;  %v200_v45 = vld [vmem:[%s598_s5 + $0x28] sm:$0xff] }
   0x5   :  { %393 = vmatprep.subr.bf16.mxu0 %v392_v16  ;;  %v195_v38 = vld [vmem:[%s598_s5] sm:$0xff]  ;;  %v404_v43 = vpack.c.bf16 %v198_v42, %v197_v41  ;;  %v201_v47 = vld [vmem:[%s598_s5 + $0x30] sm:$0xff]  ;;  %v202_v48 = vld [vmem:[%s598_s5 + $0x38] sm:$0xff] }
   0x6   :  { %395 = vmatpush3.bf16.msra.mxu0 %v392_v16  ;;  %v400_v40 = vpack.c.bf16 %v196_v39, %v195_v38  ;;  %v199_v44 = vld [vmem:[%s598_s5 + $0x20] sm:$0xff]  ;;  %v412_v49 = vpack.c.bf16 %v202_v48, %v201_v47  ;;  %v204_v51 = vld [vmem:[%s598_s5 + $0x48] sm:$0xff]  ;;  %v205_v53 = vld [vmem:[%s598_s5 + $0x50] sm:$0xff] }
   0x7   :  { %37 = vadd.xlane.f32.xlu0 %v36_v3  ;;  %397 = vmatprep.subr.bf16.mxu0 %v396_v19  ;;  %v408_v46 = vpack.c.bf16 %v200_v45, %v199_v44  ;;  %v203_v50 = vld [vmem:[%s598_s5 + $0x40] sm:$0xff]  ;;  %v206_v54 = vld [vmem:[%s598_s5 + $0x58] sm:$0xff]  ;;  %v208_v57 = vld [vmem:[%s598_s5 + $0x68] sm:$0xff] }
   0x8   :  { %401 = vmatprep.subr.bf16.mxu1 %v400_v40  ;;  %v416_v52 = vpack.c.bf16 %v204_v51, %v203_v50  ;;  %v420_v55 = vpack.c.bf16 %v206_v54, %v205_v53  ;;  %v207_v56 = vld [vmem:[%s598_s5 + $0x60] sm:$0xff]  ;;  %v209_v59 = vld [vmem:[%s598_s5 + $0x70] sm:$0xff]  ;;  %v210_v60 = vld [vmem:[%s598_s5 + $0x78] sm:$0xff] }
   0x9   :  { %403 = vmatpush3.bf16.msra.mxu1 %v400_v40  ;;  %v424_v58 = vpack.c.bf16 %v208_v57, %v207_v56  ;;  %v428_v61 = vpack.c.bf16 %v210_v60, %v209_v59  ;;  %v316_v63 = vld [vmem:[%s599_s4] ss:$0 sm:$0xff]  ;;  %v194_v18 = vld [vmem:[#allocation3 + $0x8] sm:$0xff] }
   0xa   :  { %399 = vmatpush3.bf16.msra.mxu0 %v396_v19  ;;  %405 = vmatprep.subr.bf16.mxu1 %v404_v43  ;;  %v193_v19 = vld [vmem:[#allocation3] sm:$0xff] }
   0xd   :  { %407 = vmatpush3.bf16.msra.mxu1 %v404_v43 }
   0xe   :  { %409 = vmatprep.subr.bf16.mxu1 %v408_v46 }
  0x11   :  { %411 = vmatpush3.bf16.msra.mxu1 %v408_v46 }
  0x12   :  { %413 = vmatprep.subr.bf16.mxu1 %v412_v49 }
  0x15   :  { %415 = vmatpush3.bf16.msra.mxu1 %v412_v49 }
  0x16   :  { %417 = vmatprep.subr.bf16.mxu1 %v416_v52 }
  0x19   :  { %419 = vmatpush3.bf16.msra.mxu1 %v416_v52 }
  0x1a   :  { %421 = vmatprep.subr.bf16.mxu1 %v420_v55 }
  0x1d   :  { %423 = vmatpush3.bf16.msra.mxu1 %v420_v55 }
  0x1e   :  { %425 = vmatprep.subr.bf16.mxu1 %v424_v58 }
  0x21   :  { %427 = vmatpush3.bf16.msra.mxu1 %v424_v58 }
  0x22   :  { %429 = vmatprep.subr.bf16.mxu1 %v428_v61 }
  0x25   :  { %431 = vmatpush3.bf16.msra.mxu1 %v428_v61 }
  0x90   :  { %v35_v4 = vpop.xlane.xlu0 %34 }
  0x91   :  { %v40_v5 = vmul.f32 0.03125, %v35_v4 }
  0x93   :  { %v42_v6 = vsub.f32 %v489_v0, %v40_v5 }
  0x94   :  { %v38_v7 = vpop.xlane.xlu0 %37 }
  0x95   :  { %v41_v8 = vmul.f32 0.03125, %v38_v7  ;;  %v44_v9 = vmul.f32 %v42_v6, %v42_v6 }
  0x97   :  { %v43_v10 = vsub.f32 %v494_v1, %v41_v8  ;;  %v46_v11 = vsel %vm32_vm0, %v44_v9, 0.0 }
  0x98   :  { %47 = vadd.xlane.f32.xlu1 %v46_v11 }
  0x99   :  { %v45_v12 = vmul.f32 %v43_v10, %v43_v10 }
  0x9b   :  { %v49_v13 = vsel %vm32_vm0, %v45_v12, 0.0 }
  0x9c   :  { %50 = vadd.xlane.f32.xlu1 %v49_v13 }
 0x125   :  { %v48_v20 = vpop.xlane.xlu1 %47 }
 0x126   :  { %v52_v21 = vmul.f32 0.03125, %v48_v20 }
 0x128   :  { %v54_v22 = vadd.f32 1e-05, %v52_v21 }
 0x129   :  { %v51_v23 = vpop.xlane.xlu1 %50 }
 0x12a   :  { %433 = vrsqrt.f32 %v54_v22  ;;  %v53_v24 = vmul.f32 0.03125, %v51_v23 }
 0x12c   :  { %v55_v25 = vadd.f32 1e-05, %v53_v24  ;;  %v321_v24 = vld [vmem:[%s600_s6] ss:$0 sm:$0xff] }
 0x12e   :  { %435 = vrsqrt.f32 %v55_v25 }
 0x134   :  { %v434_v26 = vpop.eup %433 }
 0x135   :  { %v58_v28 = vmul.f32 %v434_v26, %v42_v6 }
 0x137   :  { %v67_v30 = vmul.f32 %v314_v27, %v58_v28 }
 0x138   :  { %v436_v31 = vpop.eup %435 }
 0x139   :  { %v76_v32 = vadd.f32 %v315_v29, %v67_v30  ;;  %v59_v33 = vmul.f32 %v436_v31, %v43_v10 }
 0x13b   :  { %78 = vst.msk [vmem:[#allocation2] sm:$0xff] %vm32_vm0, %v76_v32  ;;  %v68_v34 = vmul.f32 %v314_v27, %v59_v33 }
 0x13d   :  { %v77_v35 = vadd.f32 %v315_v29, %v68_v34 }
 0x13f   :  { %79 = vst.msk [vmem:[#allocation2 + $0x8] sm:$0xff] %vm32_vm0, %v77_v35 }
 0x142   :  { %v82_v36 = vld [vmem:[#allocation2] sm:$0xff] }
 0x143   :  { %354 = vmatprep.mubr.msk.f32.mxu0 %vm32_vm0, %v82_v36 }
 0x146   :  { %v83_v37 = vld [vmem:[#allocation2 + $0x8] sm:$0xff] }
 0x147   :  { %355 = vmatmul.mubr.msk.f32.vlgmr.msra.gmra.mrb[0].mxu0 %vm32_vm0, %v83_v37 }
 0x21a   :  { %v356_v2 = vpop.f32.mrb[0].mxu0 }
 0x21b   :  { %v174_v3 = vadd.f32 %v356_v2, %v316_v63  ;;  %v168_v4 = vpop.f32.mrb[1].mxu0 }
 0x21c   :  { %v169_v5 = vadd.f32 %v316_v63, %v168_v4 }
 0x21d   :  { %v320_v6 = vmul.f32 -1.702, %v174_v3 }
 0x21e   :  { %v319_v7 = vmul.f32 -1.702, %v169_v5 }
 0x21f   :  { %v183_v8 = vmul.f32 1.442695, %v320_v6 }
 0x220   :  { %v181_v9 = vmul.f32 1.442695, %v319_v7 }
 0x221   :  { %437 = vpow2.f32 %v183_v8 }
 0x222   :  { %439 = vpow2.f32 %v181_v9 }
 0x22b   :  { %v438_v10 = vpop.eup %437 }
 0x22c   :  { %v440_v11 = vpop.eup %439  ;;  %v186_v12 = vadd.f32 1.0, %v438_v10 }
 0x22d   :  { %v185_v13 = vadd.f32 1.0, %v440_v11 }
 0x22e   :  { %441 = vrcp.f32 %v186_v12 }
 0x22f   :  { %443 = vrcp.f32 %v185_v13 }
 0x238   :  { %v442_v14 = vpop.eup %441 }
 0x239   :  { %v444_v15 = vpop.eup %443  ;;  %v192_v17 = vmul.f32 %v442_v14, %v174_v3 }
 0x23a   :  { %v191_v16 = vmul.f32 %v444_v15, %v169_v5 }
 0x23c   :  { %389 = vmatprep.mubr.f32.mxu1 %v191_v16 }
 0x23d   :  { %390 = vmatmul.mubr.f32.vlgmr.msra.gmra.mrb[0].mxu1 %v192_v17 }
 0x310   :  { %v391_v20 = vpop.f32.mrb[0].mxu1 }
 0x311   :  { %v287_v21 = vadd.f32 %v391_v20, %v194_v18  ;;  %v277_v22 = vpop.f32.mrb[1].mxu1 }
 0x312   :  { %v286_v23 = vadd.f32 %v277_v22, %v193_v19 }
 0x313   :  { %289 = vst.msk [vmem:[#allocation3 + $0x8] sm:$0xff] %vm32_vm0, %v287_v21 }
 0x314   :  { %288 = vst.msk [vmem:[#allocation3] sm:$0xff] %vm32_vm0, %v286_v23 }
 0x31a   :  { %v294_v25 = vld [vmem:[#allocation3 + $0x8] sm:$0xff] }
 0x31b   :  { %v303_v26 = vadd.f32 %v321_v24, %v294_v25  ;;  %v293_v27 = vld [vmem:[#allocation3] sm:$0xff] }
 0x31c   :  { %v302_v28 = vadd.f32 %v321_v24, %v293_v27 }
 0x31d   :  { %v307_v29 = vadd.f32 %v494_v1, %v303_v26 }
 0x31e   :  { %v306_v30 = vadd.f32 %v302_v28, %v489_v0 }
 0x31f   :  { %309 = vst.msk [vmem:[%s601_s7 + $0x8] sm:$0xff] %vm32_vm0, %v307_v29 }
 0x320   :  { %308 = vst.msk [vmem:[%s601_s7] sm:$0xff] %vm32_vm0, %v306_v30 }

// kernel: text_encoder_forward.13
= control target key start
LH: loop header
LB: loop body
LE: loop exit
PB: predicated region body
PF: predicated region fallthrough
CT: control target
= control target key end

     0   :  { %vm22_vm0 = vcmask 261120   ;;  %v168_v10 = vmov 0.0|0.0   ;;  %vm169_vm1 = vmmov 0   ;;  %v170_v14 = vmov 0.0   ;;  %s225_s0 = inlined_call_operand.vmem [shape: f32[8,32], index: 0, kind: input, shape index: {}]   ;;  %s226_s3 = inlined_call_operand.vmem [shape: f32[32,32], index: 3, kind: input, shape index: {}]   ;;  %s227_s1 = inlined_call_operand.vmem [shape: f32[1,32], index: 1, kind: input, shape index: {}]   ;;  %s228_s2 = inlined_call_operand.vmem [shape: f32[1,32], index: 2, kind: input, shape index: {}]   ;;  %s229_s4 = inlined_call_operand.vmem [shape: f32[8,32], index: 4, kind: output, shape index: {}]  }
   0x1   :  { %v21_v0 = vld [vmem:[%s225_s0] sm:$0xff]  ;;  %v56_v8 = vld [vmem:[%s226_s3 + $0x8] sm:$0xff]  ;;  %157 = vmatprep.subr.bf16.mxu0 %v168_v10  ;;  %v57_v11 = vld [vmem:[%s226_s3 + $0x10] sm:$0xff]  ;;  %154 = vmatprep.mubr.msk.f32.mxu0 %vm169_vm1, %v170_v14 }
   0x2   :  { %v23_v1 = vsel %vm22_vm0, %v21_v0, 0.0  ;;  %v55_v7 = vld [vmem:[%s226_s3] sm:$0xff]  ;;  %v58_v12 = vld [vmem:[%s226_s3 + $0x18] sm:$0xff] }
   0x3   :  { %24 = vadd.xlane.f32.xlu0 %v23_v1  ;;  %v158_v9 = vpack.c.bf16 %v56_v8, %v55_v7  ;;  %v161_v13 = vpack.c.bf16 %v58_v12, %v57_v11  ;;  %v138_v19 = vld [vmem:[%s227_s1] ss:$0 sm:$0xff] }
   0x4   :  { %v139_v21 = vld [vmem:[%s228_s2] ss:$0 sm:$0xff] }
   0x5   :  { %159 = vmatpush3.bf16.msra.mxu0 %v158_v9 }
   0x6   :  { %160 = vmatprep.subr.bf16.mxu0 %v168_v10 }
   0x9   :  { %162 = vmatpush3.bf16.msra.mxu0 %v161_v13 }
  0x90   :  { %v25_v2 = vpop.xlane.xlu0 %24 }
  0x91   :  { %v27_v3 = vmul.f32 0.03125, %v25_v2 }
  0x93   :  { %v28_v4 = vsub.f32 %v21_v0, %v27_v3 }
  0x95   :  { %v29_v5 = vmul.f32 %v28_v4, %v28_v4 }
  0x97   :  { %v30_v6 = vsel %vm22_vm0, %v29_v5, 0.0 }
  0x98   :  { %31 = vadd.xlane.f32.xlu0 %v30_v6 }
 0x125   :  { %v32_v15 = vpop.xlane.xlu0 %31 }
 0x126   :  { %v33_v16 = vmul.f32 0.03125, %v32_v15 }
 0x128   :  { %v34_v17 = vadd.f32 1e-05, %v33_v16 }
 0x12a   :  { %166 = vrsqrt.f32 %v34_v17 }
 0x134   :  { %v167_v18 = vpop.eup %166 }
 0x135   :  { %v36_v20 = vmul.f32 %v167_v18, %v28_v4 }
 0x137   :  { %v44_v22 = vmul.f32 %v138_v19, %v36_v20 }
 0x139   :  { %v52_v23 = vadd.f32 %v139_v21, %v44_v22 }
 0x13b   :  { %53 = vst.msk [vmem:[#allocation2] sm:$0xff] %vm22_vm0, %v52_v23 }
 0x142   :  { %v54_v24 = vld [vmem:[#allocation2] sm:$0xff] }
 0x143   :  { %155 = vmatmul.mubr.msk.f32.vlgmr.msra.gmra.mrb[0].mxu0 %vm22_vm0, %v54_v24 }
 0x216   :  { %v129_v25 = vpop.f32.mrb[0].mxu0 }
 0x217   :  { %133 = vst.msk [vmem:[%s229_s4] sm:$0xff] %vm22_vm0, %v129_v25  ;;  %v156_v26 = vpop.f32.mrb[1].mxu0 }

</bundles_post_ra>
